<compile_context>
chip_gen: v7x
topology: tpu7x:2x2x1
jax: 0.10.0
libtpu: 0.0.40
codegen_flags: <defaults>
</compile_context>

<pallas_src>
import numpy as np
import jax
import jax.numpy as jnp
from jax import lax
from jax.experimental import pallas as pl
from jax.experimental.pallas import tpu as pltpu

LANE = 128


def _round_up(x, m):
    return ((x + m - 1) // m) * m


def _vmem_limit_bytes():
    """~80% of physical VMEM: ~102 MiB on v5e/v6e (128 MiB), ~51 MiB on v7x."""
    cap = 128 * 1024 * 1024
    try:
        cap = int(getattr(pltpu.get_tpu_info(), "vmem_capacity_bytes", cap))
    except Exception:
        pass
    return (cap * 4) // 5


# ---------------------------------------------------------------------------
# Fused kernel: one batch element per grid step.
#   x_ref : (1, Hp, 2, Wp, 2*Cin)  input, pool-pair reshaped (NHWC memory)
#   w1_ref: (9, Cin, Cout_p)       conv1 weights (BN scale folded), bf16
#   s1_ref: (1, Cout_p)            conv1 fused shift (bias+BN), f32
#   w2_ref: (9, Cout_p, Cout_p)    conv2 weights, bf16
#   s2_ref: (1, Cout_p)            conv2 fused shift, f32
#   o_ref : (1, Hp, Wp, Cout)      output (unpadded channels)
#   pp_ref: (Hp+2, Wp+2, Cin)      VMEM scratch: zero-haloed pooled activation
#   y1_ref: (Hp+2, Wp+2, Cout_p)   VMEM scratch: zero-haloed conv1 activation
# ---------------------------------------------------------------------------
def _down_fused_kernel(x_ref, w1_ref, s1_ref, w2_ref, s2_ref, o_ref,
                       pp_ref, y1_ref):
    Hp2, Wp2, Cin = pp_ref.shape
    Hp, Wp = Hp2 - 2, Wp2 - 2
    Cout_p = y1_ref.shape[-1]
    Cout = o_ref.shape[-1]
    f32 = jnp.float32

    # --- zero only the 1-pixel halo strips (interior is overwritten below).
    # Re-zeroed every grid step so correctness holds if the "parallel" batch
    # axis is split across TensorCores.
    for ref, c in ((pp_ref, Cin), (y1_ref, Cout_p)):
        ref[0:1, :, :] = jnp.zeros((1, Wp2, c), f32)
        ref[Hp + 1:Hp + 2, :, :] = jnp.zeros((1, Wp2, c), f32)
        ref[:, 0:1, :] = jnp.zeros((Hp2, 1, c), f32)
        ref[:, Wp + 1:Wp + 2, :] = jnp.zeros((Hp2, 1, c), f32)

    # --- MaxPool2d(2): vertical max over the row pair, then horizontal max
    # over the two pixels packed side-by-side in the last dim (no strides).
    r_even = x_ref[0, :, 0, :, :]                     # (Hp, Wp, 2*Cin)
    r_odd = x_ref[0, :, 1, :, :]
    m = jnp.maximum(r_even, r_odd)
    pooled = jnp.maximum(m[:, :, :Cin], m[:, :, Cin:])  # (Hp, Wp, Cin)
    pp_ref[1:Hp + 1, 1:Wp + 1, :] = pooled

    # --- conv3x3 (SAME) + folded BN + ReLU: 9 tap-accumulating MXU matmuls.
    def conv3x3_bn_relu(src_ref, w_ref, s_ref, cin):
        acc = None
        for dy in range(3):
            for dx in range(3):
                tap = src_ref[dy:dy + Hp, dx:dx + Wp, :]
                tap = tap.reshape(Hp * Wp, cin).astype(jnp.bfloat16)
                part = jnp.dot(tap, w_ref[3 * dy + dx],
                               preferred_element_type=jnp.float32)
                acc = part if acc is None else acc + part
        # BN scale already folded into w; conv bias folded into the shift.
        return jnp.maximum(acc + s_ref[...], 0.0)        # (Hp*Wp, Cout_p) f32

    # conv1 + BN + ReLU (intermediate stays in VMEM)
    y1 = conv3x3_bn_relu(pp_ref, w1_ref, s1_ref, Cin)
    y1_ref[1:Hp + 1, 1:Wp + 1, :] = y1.reshape(Hp, Wp, Cout_p)

    # conv2 + BN + ReLU -> output (drop channel padding at the store)
    y2 = conv3x3_bn_relu(y1_ref, w2_ref, s2_ref, Cout_p)
    y2 = y2.reshape(Hp, Wp, Cout_p)
    o_ref[0] = y2 if Cout == Cout_p else y2[:, :, :Cout]


# ---------------------------------------------------------------------------
# Wrapper: parameter folding + pallas_call + layout plumbing
# ---------------------------------------------------------------------------
def _fold_layer(w, b, scale, shift, cin_p, cout_p):
    """Fold BN scale into the conv weights and the conv bias into the BN
    shift; pad channels; return weights in (9, cin_p, cout_p) tap layout."""
    cin, cout = w.shape[2], w.shape[3]
    w_eff = w * scale                                     # (3,3,cin,cout)
    shift_eff = b * scale + shift                         # (cout,)
    w_eff = jnp.pad(w_eff, ((0, 0), (0, 0),
                            (0, cin_p - cin), (0, cout_p - cout)))
    shift_eff = jnp.pad(shift_eff, (0, cout_p - cout))
    return (w_eff.reshape(9, cin_p, cout_p).astype(jnp.bfloat16),
            shift_eff.reshape(1, cout_p).astype(jnp.float32))


def down_forward(x_nchw, params):
    # TODO(synk): BatchNorm is applied in eval mode (folded running stats);
    # train-mode per-batch statistics are not reproduced.
    # TODO(synk): for large images (esp. v7x, 64 MiB VMEM) add an Hp-row grid
    # axis with a 2-row halo; whole-image blocks are fine at these sizes.
    # TODO(synk): if the surrounding model runs NHWC, drop both wrapper
    # transposes (each is a full HBM pass outside the kernel).
    (w1, b1, sc1, sh1), (w2, b2, sc2, sh2) = params
    N, Cin, H, W = x_nchw.shape
    Cout = w1.shape[-1]
    H, W = 2 * (H // 2), 2 * (W // 2)          # MaxPool2d(2) floors odd sizes
    Hp, Wp = H // 2, W // 2
    Cout_p = _round_up(Cout, LANE)

    # NCHW -> NHWC (channels on the lane axis), crop odd rows/cols, then a
    # free row-major reshape packing each 2x2 pool window's row pair / pixel
    # pair: (N, H, W, Cin) -> (N, Hp, 2, Wp, 2*Cin).  No channel padding.
    x = jnp.transpose(x_nchw[:, :, :H, :W], (0, 2, 3, 1))
    x = x.reshape(N, Hp, 2, Wp, 2 * Cin)

    w1m, s1 = _fold_layer(w1, b1, sc1, sh1, Cin, Cout_p)
    w2m, s2 = _fold_layer(w2, b2, sc2, sh2, Cout_p, Cout_p)

    out = pl.pallas_call(
        _down_fused_kernel,
        out_shape=jax.ShapeDtypeStruct((N, Hp, Wp, Cout), jnp.float32),
        grid=(N,),
        in_specs=[
            pl.BlockSpec((1, Hp, 2, Wp, 2 * Cin), lambda n: (n, 0, 0, 0, 0)),
            pl.BlockSpec((9, Cin, Cout_p), lambda n: (0, 0, 0)),
            pl.BlockSpec((1, Cout_p), lambda n: (0, 0)),
            pl.BlockSpec((9, Cout_p, Cout_p), lambda n: (0, 0, 0)),
            pl.BlockSpec((1, Cout_p), lambda n: (0, 0)),
        ],
        out_specs=pl.BlockSpec((1, Hp, Wp, Cout), lambda n: (n, 0, 0, 0)),
        scratch_shapes=[
            pltpu.VMEM((Hp + 2, Wp + 2, Cin), jnp.float32),
            pltpu.VMEM((Hp + 2, Wp + 2, Cout_p), jnp.float32),
        ],
        compiler_params=pltpu.CompilerParams(
            dimension_semantics=("parallel",),
            vmem_limit_bytes=_vmem_limit_bytes()),
    )(x, w1m, s1, w2m, s2)

    # NHWC -> NCHW
    return jnp.transpose(out, (0, 3, 1, 2))


# ---------------------------------------------------------------------------
# Parameter setup + pure-JAX reference
# ---------------------------------------------------------------------------
def init_down_params(key, in_ch, out_ch, eps=1e-5):
    """Two (conv3x3 + BN) layers; BN running stats folded into scale/shift."""
    params = []
    for i, (ci, co) in enumerate([(in_ch, out_ch), (out_ch, out_ch)]):
        k = jax.random.fold_in(key, i)
        kw, kb, kg, kbe, km, kv = jax.random.split(k, 6)
        w = jax.random.normal(kw, (3, 3, ci, co), jnp.float32) * 0.1   # HWIO
        b = jax.random.normal(kb, (co,), jnp.float32) * 0.05
        gamma = jax.random.uniform(kg, (co,), jnp.float32, 0.5, 1.5)
        beta = jax.random.normal(kbe, (co,), jnp.float32) * 0.05
        rmean = jax.random.normal(km, (co,), jnp.float32) * 0.05
        rvar = jax.random.uniform(kv, (co,), jnp.float32, 0.5, 1.5)
        scale = gamma / jnp.sqrt(rvar + eps)
        shift = beta - rmean * scale
        params.append((w, b, scale, shift))
    return params


def down_forward_ref(x_nchw, params):
    x = jnp.transpose(x_nchw, (0, 2, 3, 1))
    x = lax.reduce_window(x, -jnp.inf, lax.max, (1, 2, 2, 1), (1, 2, 2, 1), "VALID")
    for (w, b, scale, shift) in params:
        y = lax.conv_general_dilated(
            x, w, window_strides=(1, 1), padding="SAME",
            dimension_numbers=("NHWC", "HWIO", "NHWC"))
        y = (y + b) * scale + shift
        x = jnp.maximum(y, 0.0)
    return jnp.transpose(x, (0, 3, 1, 2))


if __name__ == "__main__":
    key = jax.random.PRNGKey(0)
    kx, kp = jax.random.split(key)
    N, Cin, H, W = 2, 4, 16, 16
    Cout = 8
    x = jax.random.normal(kx, (N, Cin, H, W), jnp.float32)
    params = init_down_params(kp, Cin, Cout)

    out = jax.jit(down_forward)(x, params)
    out = jax.block_until_ready(out)

    assert out.shape == (N, Cout, H // 2, W // 2), out.shape
    ref = down_forward_ref(x, params)
    # bf16 MXU operands (f32 accumulation) -> loosened tolerance vs f32 ref.
    np.testing.assert_allclose(np.asarray(out), np.asarray(ref),
                               rtol=5e-2, atol=5e-2)
    print("KERNEL_OK")
</pallas_src>

<mosaic_0001>
module attributes {stable_mosaic.version = 11 : i64} {
  func.func @_down_fused_kernel(%arg0: i32, %arg1: memref<1x8x2x8x8xf32, #tpu.memory_space<vmem>>, %arg2: memref<9x4x128xbf16, #tpu.memory_space<vmem>>, %arg3: memref<1x128xf32, #tpu.memory_space<vmem>>, %arg4: memref<9x128x128xbf16, #tpu.memory_space<vmem>>, %arg5: memref<1x128xf32, #tpu.memory_space<vmem>>, %arg6: memref<1x8x8x8xf32, #tpu.memory_space<vmem>>, %arg7: memref<10x10x4xf32, #tpu.memory_space<vmem>>, %arg8: memref<10x10x128xf32, #tpu.memory_space<vmem>>) attributes {dimension_semantics = [#tpu.dimension_semantics<parallel>], iteration_bounds = array<i64: 2>, scalar_prefetch = 0 : i64, scratch_operands = 2 : i64, tpu.core_type = #tpu.core_type<tc>, window_params = [{transform_indices = @transform_0, window_bounds = array<i64: 1, 8, 2, 8, 8>}, {pipeline_mode = #tpu.pipeline_mode<synchronous>, transform_indices = @transform_1, window_bounds = array<i64: 9, 4, 128>}, {pipeline_mode = #tpu.pipeline_mode<synchronous>, transform_indices = @transform_2, window_bounds = array<i64: 1, 128>}, {pipeline_mode = #tpu.pipeline_mode<synchronous>, transform_indices = @transform_3, window_bounds = array<i64: 9, 128, 128>}, {pipeline_mode = #tpu.pipeline_mode<synchronous>, transform_indices = @transform_4, window_bounds = array<i64: 1, 128>}, {transform_indices = @transform_5, window_bounds = array<i64: 1, 8, 8, 8>}]} {
    %cst = arith.constant 0.000000e+00 : f32
    %0 = vector.broadcast %cst : f32 to vector<1x10x4xf32>
    %c0 = arith.constant 0 : index
    %c0_0 = arith.constant 0 : index
    %c0_1 = arith.constant 0 : index
    %1 = vector.load %arg7[%c0, %c0_0, %c0_1] : memref<10x10x4xf32, #tpu.memory_space<vmem>>, vector<1x10x4xf32>
    tpu.vector_store %arg7[%c0, %c0_0, %c0_1], %0 {strides = array<i32>} : memref<10x10x4xf32, #tpu.memory_space<vmem>>, vector<1x10x4xf32>,
    %cst_2 = arith.constant 0.000000e+00 : f32
    %2 = vector.broadcast %cst_2 : f32 to vector<1x10x4xf32>
    %c9 = arith.constant 9 : index
    %c0_3 = arith.constant 0 : index
    %c0_4 = arith.constant 0 : index
    %3 = vector.load %arg7[%c9, %c0_3, %c0_4] : memref<10x10x4xf32, #tpu.memory_space<vmem>>, vector<1x10x4xf32>
    tpu.vector_store %arg7[%c9, %c0_3, %c0_4], %2 {strides = array<i32>} : memref<10x10x4xf32, #tpu.memory_space<vmem>>, vector<1x10x4xf32>,
    %cst_5 = arith.constant 0.000000e+00 : f32
    %4 = vector.broadcast %cst_5 : f32 to vector<10x1x4xf32>
    %c0_6 = arith.constant 0 : index
    %c0_7 = arith.constant 0 : index
    %c0_8 = arith.constant 0 : index
    %5 = vector.load %arg7[%c0_6, %c0_7, %c0_8] : memref<10x10x4xf32, #tpu.memory_space<vmem>>, vector<10x1x4xf32>
    tpu.vector_store %arg7[%c0_6, %c0_7, %c0_8], %4 {strides = array<i32>} : memref<10x10x4xf32, #tpu.memory_space<vmem>>, vector<10x1x4xf32>,
    %cst_9 = arith.constant 0.000000e+00 : f32
    %6 = vector.broadcast %cst_9 : f32 to vector<10x1x4xf32>
    %c0_10 = arith.constant 0 : index
    %c9_11 = arith.constant 9 : index
    %c0_12 = arith.constant 0 : index
    %7 = vector.load %arg7[%c0_10, %c9_11, %c0_12] : memref<10x10x4xf32, #tpu.memory_space<vmem>>, vector<10x1x4xf32>
    tpu.vector_store %arg7[%c0_10, %c9_11, %c0_12], %6 {strides = array<i32>} : memref<10x10x4xf32, #tpu.memory_space<vmem>>, vector<10x1x4xf32>,
    %cst_13 = arith.constant 0.000000e+00 : f32
    %8 = vector.broadcast %cst_13 : f32 to vector<1x10x128xf32>
    %c0_14 = arith.constant 0 : index
    %c0_15 = arith.constant 0 : index
    %c0_16 = arith.constant 0 : index
    %9 = vector.load %arg8[%c0_14, %c0_15, %c0_16] : memref<10x10x128xf32, #tpu.memory_space<vmem>>, vector<1x10x128xf32>
    tpu.vector_store %arg8[%c0_14, %c0_15, %c0_16], %8 {strides = array<i32>} : memref<10x10x128xf32, #tpu.memory_space<vmem>>, vector<1x10x128xf32>,
    %cst_17 = arith.constant 0.000000e+00 : f32
    %10 = vector.broadcast %cst_17 : f32 to vector<1x10x128xf32>
    %c9_18 = arith.constant 9 : index
    %c0_19 = arith.constant 0 : index
    %c0_20 = arith.constant 0 : index
    %11 = vector.load %arg8[%c9_18, %c0_19, %c0_20] : memref<10x10x128xf32, #tpu.memory_space<vmem>>, vector<1x10x128xf32>
    tpu.vector_store %arg8[%c9_18, %c0_19, %c0_20], %10 {strides = array<i32>} : memref<10x10x128xf32, #tpu.memory_space<vmem>>, vector<1x10x128xf32>,
    %cst_21 = arith.constant 0.000000e+00 : f32
    %12 = vector.broadcast %cst_21 : f32 to vector<10x1x128xf32>
    %c0_22 = arith.constant 0 : index
    %c0_23 = arith.constant 0 : index
    %c0_24 = arith.constant 0 : index
    %13 = vector.load %arg8[%c0_22, %c0_23, %c0_24] : memref<10x10x128xf32, #tpu.memory_space<vmem>>, vector<10x1x128xf32>
    tpu.vector_store %arg8[%c0_22, %c0_23, %c0_24], %12 {strides = array<i32>} : memref<10x10x128xf32, #tpu.memory_space<vmem>>, vector<10x1x128xf32>,
    %cst_25 = arith.constant 0.000000e+00 : f32
    %14 = vector.broadcast %cst_25 : f32 to vector<10x1x128xf32>
    %c0_26 = arith.constant 0 : index
    %c9_27 = arith.constant 9 : index
    %c0_28 = arith.constant 0 : index
    %15 = vector.load %arg8[%c0_26, %c9_27, %c0_28] : memref<10x10x128xf32, #tpu.memory_space<vmem>>, vector<10x1x128xf32>
    tpu.vector_store %arg8[%c0_26, %c9_27, %c0_28], %14 {strides = array<i32>} : memref<10x10x128xf32, #tpu.memory_space<vmem>>, vector<10x1x128xf32>,
    %c0_29 = arith.constant 0 : index
    %c0_30 = arith.constant 0 : index
    %c0_31 = arith.constant 0 : index
    %c0_32 = arith.constant 0 : index
    %c0_33 = arith.constant 0 : index
    %16 = vector.load %arg1[%c0_29, %c0_30, %c0_31, %c0_32, %c0_33] : memref<1x8x2x8x8xf32, #tpu.memory_space<vmem>>, vector<1x8x1x8x8xf32>
    %17 = vector.shape_cast %16 : vector<1x8x1x8x8xf32> to vector<8x8x8xf32>
    %c0_34 = arith.constant 0 : index
    %c0_35 = arith.constant 0 : index
    %c1 = arith.constant 1 : index
    %c0_36 = arith.constant 0 : index
    %c0_37 = arith.constant 0 : index
    %18 = vector.load %arg1[%c0_34, %c0_35, %c1, %c0_36, %c0_37] : memref<1x8x2x8x8xf32, #tpu.memory_space<vmem>>, vector<1x8x1x8x8xf32>
    %19 = vector.shape_cast %18 : vector<1x8x1x8x8xf32> to vector<8x8x8xf32>
    %20 = arith.maximumf %17, %19 : vector<8x8x8xf32>
    %21 = vector.extract_strided_slice %20 {offsets = [0, 0, 0], sizes = [8, 8, 4], strides = [1, 1, 1]} : vector<8x8x8xf32> to vector<8x8x4xf32>
    %22 = vector.extract_strided_slice %20 {offsets = [0, 0, 4], sizes = [8, 8, 4], strides = [1, 1, 1]} : vector<8x8x8xf32> to vector<8x8x4xf32>
    %23 = arith.maximumf %21, %22 : vector<8x8x4xf32>
    %c1_38 = arith.constant 1 : index
    %c1_39 = arith.constant 1 : index
    %c0_40 = arith.constant 0 : index
    %24 = vector.load %arg7[%c1_38, %c1_39, %c0_40] : memref<10x10x4xf32, #tpu.memory_space<vmem>>, vector<8x8x4xf32>
    tpu.vector_store %arg7[%c1_38, %c1_39, %c0_40], %23 {strides = array<i32>} : memref<10x10x4xf32, #tpu.memory_space<vmem>>, vector<8x8x4xf32>,
    %c0_41 = arith.constant 0 : index
    %c0_42 = arith.constant 0 : index
    %c0_43 = arith.constant 0 : index
    %25 = vector.load %arg7[%c0_41, %c0_42, %c0_43] : memref<10x10x4xf32, #tpu.memory_space<vmem>>, vector<8x8x4xf32>
    %26 = vector.shape_cast %25 : vector<8x8x4xf32> to vector<64x4xf32>
    %27 = arith.truncf %26 : vector<64x4xf32> to vector<64x4xbf16>
    %c0_44 = arith.constant 0 : index
    %c0_45 = arith.constant 0 : index
    %c0_46 = arith.constant 0 : index
    %28 = vector.load %arg2[%c0_44, %c0_45, %c0_46] : memref<9x4x128xbf16, #tpu.memory_space<vmem>>, vector<1x4x128xbf16>
    %29 = vector.shape_cast %28 : vector<1x4x128xbf16> to vector<4x128xbf16>
    %cst_47 = arith.constant dense<0.000000e+00> : vector<64x128xf32>
    %30 = tpu.matmul %27, %29, %cst_47 {dimension_numbers = #tpu.dot_dimension_numbers<[1], [0], [0], [1], [0, 0, 1, 1], [], []>} : vector<64x4xbf16>, vector<4x128xbf16>, vector<64x128xf32> -> vector<64x128xf32>
    %c0_48 = arith.constant 0 : index
    %c1_49 = arith.constant 1 : index
    %c0_50 = arith.constant 0 : index
    %31 = vector.load %arg7[%c0_48, %c1_49, %c0_50] : memref<10x10x4xf32, #tpu.memory_space<vmem>>, vector<8x8x4xf32>
    %32 = vector.shape_cast %31 : vector<8x8x4xf32> to vector<64x4xf32>
    %33 = arith.truncf %32 : vector<64x4xf32> to vector<64x4xbf16>
    %c1_51 = arith.constant 1 : index
    %c0_52 = arith.constant 0 : index
    %c0_53 = arith.constant 0 : index
    %34 = vector.load %arg2[%c1_51, %c0_52, %c0_53] : memref<9x4x128xbf16, #tpu.memory_space<vmem>>, vector<1x4x128xbf16>
    %35 = vector.shape_cast %34 : vector<1x4x128xbf16> to vector<4x128xbf16>
    %cst_54 = arith.constant dense<0.000000e+00> : vector<64x128xf32>
    %36 = tpu.matmul %33, %35, %cst_54 {dimension_numbers = #tpu.dot_dimension_numbers<[1], [0], [0], [1], [0, 0, 1, 1], [], []>} : vector<64x4xbf16>, vector<4x128xbf16>, vector<64x128xf32> -> vector<64x128xf32>
    %37 = arith.addf %30, %36 : vector<64x128xf32>
    %c0_55 = arith.constant 0 : index
    %c2 = arith.constant 2 : index
    %c0_56 = arith.constant 0 : index
    %38 = vector.load %arg7[%c0_55, %c2, %c0_56] : memref<10x10x4xf32, #tpu.memory_space<vmem>>, vector<8x8x4xf32>
    %39 = vector.shape_cast %38 : vector<8x8x4xf32> to vector<64x4xf32>
    %40 = arith.truncf %39 : vector<64x4xf32> to vector<64x4xbf16>
    %c2_57 = arith.constant 2 : index
    %c0_58 = arith.constant 0 : index
    %c0_59 = arith.constant 0 : index
    %41 = vector.load %arg2[%c2_57, %c0_58, %c0_59] : memref<9x4x128xbf16, #tpu.memory_space<vmem>>, vector<1x4x128xbf16>
    %42 = vector.shape_cast %41 : vector<1x4x128xbf16> to vector<4x128xbf16>
    %cst_60 = arith.constant dense<0.000000e+00> : vector<64x128xf32>
    %43 = tpu.matmul %40, %42, %cst_60 {dimension_numbers = #tpu.dot_dimension_numbers<[1], [0], [0], [1], [0, 0, 1, 1], [], []>} : vector<64x4xbf16>, vector<4x128xbf16>, vector<64x128xf32> -> vector<64x128xf32>
    %44 = arith.addf %37, %43 : vector<64x128xf32>
    %c1_61 = arith.constant 1 : index
    %c0_62 = arith.constant 0 : index
    %c0_63 = arith.constant 0 : index
    %45 = vector.load %arg7[%c1_61, %c0_62, %c0_63] : memref<10x10x4xf32, #tpu.memory_space<vmem>>, vector<8x8x4xf32>
    %46 = vector.shape_cast %45 : vector<8x8x4xf32> to vector<64x4xf32>
    %47 = arith.truncf %46 : vector<64x4xf32> to vector<64x4xbf16>
    %c3 = arith.constant 3 : index
    %c0_64 = arith.constant 0 : index
    %c0_65 = arith.constant 0 : index
    %48 = vector.load %arg2[%c3, %c0_64, %c0_65] : memref<9x4x128xbf16, #tpu.memory_space<vmem>>, vector<1x4x128xbf16>
    %49 = vector.shape_cast %48 : vector<1x4x128xbf16> to vector<4x128xbf16>
    %cst_66 = arith.constant dense<0.000000e+00> : vector<64x128xf32>
    %50 = tpu.matmul %47, %49, %cst_66 {dimension_numbers = #tpu.dot_dimension_numbers<[1], [0], [0], [1], [0, 0, 1, 1], [], []>} : vector<64x4xbf16>, vector<4x128xbf16>, vector<64x128xf32> -> vector<64x128xf32>
    %51 = arith.addf %44, %50 : vector<64x128xf32>
    %c1_67 = arith.constant 1 : index
    %c1_68 = arith.constant 1 : index
    %c0_69 = arith.constant 0 : index
    %52 = vector.load %arg7[%c1_67, %c1_68, %c0_69] : memref<10x10x4xf32, #tpu.memory_space<vmem>>, vector<8x8x4xf32>
    %53 = vector.shape_cast %52 : vector<8x8x4xf32> to vector<64x4xf32>
    %54 = arith.truncf %53 : vector<64x4xf32> to vector<64x4xbf16>
    %c4 = arith.constant 4 : index
    %c0_70 = arith.constant 0 : index
    %c0_71 = arith.constant 0 : index
    %55 = vector.load %arg2[%c4, %c0_70, %c0_71] : memref<9x4x128xbf16, #tpu.memory_space<vmem>>, vector<1x4x128xbf16>
    %56 = vector.shape_cast %55 : vector<1x4x128xbf16> to vector<4x128xbf16>
    %cst_72 = arith.constant dense<0.000000e+00> : vector<64x128xf32>
    %57 = tpu.matmul %54, %56, %cst_72 {dimension_numbers = #tpu.dot_dimension_numbers<[1], [0], [0], [1], [0, 0, 1, 1], [], []>} : vector<64x4xbf16>, vector<4x128xbf16>, vector<64x128xf32> -> vector<64x128xf32>
    %58 = arith.addf %51, %57 : vector<64x128xf32>
    %c1_73 = arith.constant 1 : index
    %c2_74 = arith.constant 2 : index
    %c0_75 = arith.constant 0 : index
    %59 = vector.load %arg7[%c1_73, %c2_74, %c0_75] : memref<10x10x4xf32, #tpu.memory_space<vmem>>, vector<8x8x4xf32>
    %60 = vector.shape_cast %59 : vector<8x8x4xf32> to vector<64x4xf32>
    %61 = arith.truncf %60 : vector<64x4xf32> to vector<64x4xbf16>
    %c5 = arith.constant 5 : index
    %c0_76 = arith.constant 0 : index
    %c0_77 = arith.constant 0 : index
    %62 = vector.load %arg2[%c5, %c0_76, %c0_77] : memref<9x4x128xbf16, #tpu.memory_space<vmem>>, vector<1x4x128xbf16>
    %63 = vector.shape_cast %62 : vector<1x4x128xbf16> to vector<4x128xbf16>
    %cst_78 = arith.constant dense<0.000000e+00> : vector<64x128xf32>
    %64 = tpu.matmul %61, %63, %cst_78 {dimension_numbers = #tpu.dot_dimension_numbers<[1], [0], [0], [1], [0, 0, 1, 1], [], []>} : vector<64x4xbf16>, vector<4x128xbf16>, vector<64x128xf32> -> vector<64x128xf32>
    %65 = arith.addf %58, %64 : vector<64x128xf32>
    %c2_79 = arith.constant 2 : index
    %c0_80 = arith.constant 0 : index
    %c0_81 = arith.constant 0 : index
    %66 = vector.load %arg7[%c2_79, %c0_80, %c0_81] : memref<10x10x4xf32, #tpu.memory_space<vmem>>, vector<8x8x4xf32>
    %67 = vector.shape_cast %66 : vector<8x8x4xf32> to vector<64x4xf32>
    %68 = arith.truncf %67 : vector<64x4xf32> to vector<64x4xbf16>
    %c6 = arith.constant 6 : index
    %c0_82 = arith.constant 0 : index
    %c0_83 = arith.constant 0 : index
    %69 = vector.load %arg2[%c6, %c0_82, %c0_83] : memref<9x4x128xbf16, #tpu.memory_space<vmem>>, vector<1x4x128xbf16>
    %70 = vector.shape_cast %69 : vector<1x4x128xbf16> to vector<4x128xbf16>
    %cst_84 = arith.constant dense<0.000000e+00> : vector<64x128xf32>
    %71 = tpu.matmul %68, %70, %cst_84 {dimension_numbers = #tpu.dot_dimension_numbers<[1], [0], [0], [1], [0, 0, 1, 1], [], []>} : vector<64x4xbf16>, vector<4x128xbf16>, vector<64x128xf32> -> vector<64x128xf32>
    %72 = arith.addf %65, %71 : vector<64x128xf32>
    %c2_85 = arith.constant 2 : index
    %c1_86 = arith.constant 1 : index
    %c0_87 = arith.constant 0 : index
    %73 = vector.load %arg7[%c2_85, %c1_86, %c0_87] : memref<10x10x4xf32, #tpu.memory_space<vmem>>, vector<8x8x4xf32>
    %74 = vector.shape_cast %73 : vector<8x8x4xf32> to vector<64x4xf32>
    %75 = arith.truncf %74 : vector<64x4xf32> to vector<64x4xbf16>
    %c7 = arith.constant 7 : index
    %c0_88 = arith.constant 0 : index
    %c0_89 = arith.constant 0 : index
    %76 = vector.load %arg2[%c7, %c0_88, %c0_89] : memref<9x4x128xbf16, #tpu.memory_space<vmem>>, vector<1x4x128xbf16>
    %77 = vector.shape_cast %76 : vector<1x4x128xbf16> to vector<4x128xbf16>
    %cst_90 = arith.constant dense<0.000000e+00> : vector<64x128xf32>
    %78 = tpu.matmul %75, %77, %cst_90 {dimension_numbers = #tpu.dot_dimension_numbers<[1], [0], [0], [1], [0, 0, 1, 1], [], []>} : vector<64x4xbf16>, vector<4x128xbf16>, vector<64x128xf32> -> vector<64x128xf32>
    %79 = arith.addf %72, %78 : vector<64x128xf32>
    %c2_91 = arith.constant 2 : index
    %c2_92 = arith.constant 2 : index
    %c0_93 = arith.constant 0 : index
    %80 = vector.load %arg7[%c2_91, %c2_92, %c0_93] : memref<10x10x4xf32, #tpu.memory_space<vmem>>, vector<8x8x4xf32>
    %81 = vector.shape_cast %80 : vector<8x8x4xf32> to vector<64x4xf32>
    %82 = arith.truncf %81 : vector<64x4xf32> to vector<64x4xbf16>
    %c8 = arith.constant 8 : index
    %c0_94 = arith.constant 0 : index
    %c0_95 = arith.constant 0 : index
    %83 = vector.load %arg2[%c8, %c0_94, %c0_95] : memref<9x4x128xbf16, #tpu.memory_space<vmem>>, vector<1x4x128xbf16>
    %84 = vector.shape_cast %83 : vector<1x4x128xbf16> to vector<4x128xbf16>
    %cst_96 = arith.constant dense<0.000000e+00> : vector<64x128xf32>
    %85 = tpu.matmul %82, %84, %cst_96 {dimension_numbers = #tpu.dot_dimension_numbers<[1], [0], [0], [1], [0, 0, 1, 1], [], []>} : vector<64x4xbf16>, vector<4x128xbf16>, vector<64x128xf32> -> vector<64x128xf32>
    %86 = arith.addf %79, %85 : vector<64x128xf32>
    %c0_97 = arith.constant 0 : index
    %c0_98 = arith.constant 0 : index
    %87 = vector.load %arg3[%c0_97, %c0_98] : memref<1x128xf32, #tpu.memory_space<vmem>>, vector<1x128xf32>
    %88 = vector.broadcast %87 : vector<1x128xf32> to vector<64x128xf32>
    %89 = arith.addf %86, %88 : vector<64x128xf32>
    %cst_99 = arith.constant 0.000000e+00 : f32
    %90 = vector.broadcast %cst_99 : f32 to vector<64x128xf32>
    %91 = arith.maximumf %89, %90 : vector<64x128xf32>
    %92 = vector.shape_cast %91 : vector<64x128xf32> to vector<8x8x128xf32>
    %c1_100 = arith.constant 1 : index
    %c1_101 = arith.constant 1 : index
    %c0_102 = arith.constant 0 : index
    %93 = vector.load %arg8[%c1_100, %c1_101, %c0_102] : memref<10x10x128xf32, #tpu.memory_space<vmem>>, vector<8x8x128xf32>
    tpu.vector_store %arg8[%c1_100, %c1_101, %c0_102], %92 {strides = array<i32>} : memref<10x10x128xf32, #tpu.memory_space<vmem>>, vector<8x8x128xf32>,
    %c0_103 = arith.constant 0 : index
    %c0_104 = arith.constant 0 : index
    %c0_105 = arith.constant 0 : index
    %94 = vector.load %arg8[%c0_103, %c0_104, %c0_105] : memref<10x10x128xf32, #tpu.memory_space<vmem>>, vector<8x8x128xf32>
    %95 = vector.shape_cast %94 : vector<8x8x128xf32> to vector<64x128xf32>
    %96 = arith.truncf %95 : vector<64x128xf32> to vector<64x128xbf16>
    %c0_106 = arith.constant 0 : index
    %c0_107 = arith.constant 0 : index
    %c0_108 = arith.constant 0 : index
    %97 = vector.load %arg4[%c0_106, %c0_107, %c0_108] : memref<9x128x128xbf16, #tpu.memory_space<vmem>>, vector<1x128x128xbf16>
    %98 = vector.shape_cast %97 : vector<1x128x128xbf16> to vector<128x128xbf16>
    %cst_109 = arith.constant dense<0.000000e+00> : vector<64x128xf32>
    %99 = tpu.matmul %96, %98, %cst_109 {dimension_numbers = #tpu.dot_dimension_numbers<[1], [0], [0], [1], [0, 0, 1, 1], [], []>} : vector<64x128xbf16>, vector<128x128xbf16>, vector<64x128xf32> -> vector<64x128xf32>
    %c0_110 = arith.constant 0 : index
    %c1_111 = arith.constant 1 : index
    %c0_112 = arith.constant 0 : index
    %100 = vector.load %arg8[%c0_110, %c1_111, %c0_112] : memref<10x10x128xf32, #tpu.memory_space<vmem>>, vector<8x8x128xf32>
    %101 = vector.shape_cast %100 : vector<8x8x128xf32> to vector<64x128xf32>
    %102 = arith.truncf %101 : vector<64x128xf32> to vector<64x128xbf16>
    %c1_113 = arith.constant 1 : index
    %c0_114 = arith.constant 0 : index
    %c0_115 = arith.constant 0 : index
    %103 = vector.load %arg4[%c1_113, %c0_114, %c0_115] : memref<9x128x128xbf16, #tpu.memory_space<vmem>>, vector<1x128x128xbf16>
    %104 = vector.shape_cast %103 : vector<1x128x128xbf16> to vector<128x128xbf16>
    %cst_116 = arith.constant dense<0.000000e+00> : vector<64x128xf32>
    %105 = tpu.matmul %102, %104, %cst_116 {dimension_numbers = #tpu.dot_dimension_numbers<[1], [0], [0], [1], [0, 0, 1, 1], [], []>} : vector<64x128xbf16>, vector<128x128xbf16>, vector<64x128xf32> -> vector<64x128xf32>
    %106 = arith.addf %99, %105 : vector<64x128xf32>
    %c0_117 = arith.constant 0 : index
    %c2_118 = arith.constant 2 : index
    %c0_119 = arith.constant 0 : index
    %107 = vector.load %arg8[%c0_117, %c2_118, %c0_119] : memref<10x10x128xf32, #tpu.memory_space<vmem>>, vector<8x8x128xf32>
    %108 = vector.shape_cast %107 : vector<8x8x128xf32> to vector<64x128xf32>
    %109 = arith.truncf %108 : vector<64x128xf32> to vector<64x128xbf16>
    %c2_120 = arith.constant 2 : index
    %c0_121 = arith.constant 0 : index
    %c0_122 = arith.constant 0 : index
    %110 = vector.load %arg4[%c2_120, %c0_121, %c0_122] : memref<9x128x128xbf16, #tpu.memory_space<vmem>>, vector<1x128x128xbf16>
    %111 = vector.shape_cast %110 : vector<1x128x128xbf16> to vector<128x128xbf16>
    %cst_123 = arith.constant dense<0.000000e+00> : vector<64x128xf32>
    %112 = tpu.matmul %109, %111, %cst_123 {dimension_numbers = #tpu.dot_dimension_numbers<[1], [0], [0], [1], [0, 0, 1, 1], [], []>} : vector<64x128xbf16>, vector<128x128xbf16>, vector<64x128xf32> -> vector<64x128xf32>
    %113 = arith.addf %106, %112 : vector<64x128xf32>
    %c1_124 = arith.constant 1 : index
    %c0_125 = arith.constant 0 : index
    %c0_126 = arith.constant 0 : index
    %114 = vector.load %arg8[%c1_124, %c0_125, %c0_126] : memref<10x10x128xf32, #tpu.memory_space<vmem>>, vector<8x8x128xf32>
    %115 = vector.shape_cast %114 : vector<8x8x128xf32> to vector<64x128xf32>
    %116 = arith.truncf %115 : vector<64x128xf32> to vector<64x128xbf16>
    %c3_127 = arith.constant 3 : index
    %c0_128 = arith.constant 0 : index
    %c0_129 = arith.constant 0 : index
    %117 = vector.load %arg4[%c3_127, %c0_128, %c0_129] : memref<9x128x128xbf16, #tpu.memory_space<vmem>>, vector<1x128x128xbf16>
    %118 = vector.shape_cast %117 : vector<1x128x128xbf16> to vector<128x128xbf16>
    %cst_130 = arith.constant dense<0.000000e+00> : vector<64x128xf32>
    %119 = tpu.matmul %116, %118, %cst_130 {dimension_numbers = #tpu.dot_dimension_numbers<[1], [0], [0], [1], [0, 0, 1, 1], [], []>} : vector<64x128xbf16>, vector<128x128xbf16>, vector<64x128xf32> -> vector<64x128xf32>
    %120 = arith.addf %113, %119 : vector<64x128xf32>
    %c1_131 = arith.constant 1 : index
    %c1_132 = arith.constant 1 : index
    %c0_133 = arith.constant 0 : index
    %121 = vector.load %arg8[%c1_131, %c1_132, %c0_133] : memref<10x10x128xf32, #tpu.memory_space<vmem>>, vector<8x8x128xf32>
    %122 = vector.shape_cast %121 : vector<8x8x128xf32> to vector<64x128xf32>
    %123 = arith.truncf %122 : vector<64x128xf32> to vector<64x128xbf16>
    %c4_134 = arith.constant 4 : index
    %c0_135 = arith.constant 0 : index
    %c0_136 = arith.constant 0 : index
    %124 = vector.load %arg4[%c4_134, %c0_135, %c0_136] : memref<9x128x128xbf16, #tpu.memory_space<vmem>>, vector<1x128x128xbf16>
    %125 = vector.shape_cast %124 : vector<1x128x128xbf16> to vector<128x128xbf16>
    %cst_137 = arith.constant dense<0.000000e+00> : vector<64x128xf32>
    %126 = tpu.matmul %123, %125, %cst_137 {dimension_numbers = #tpu.dot_dimension_numbers<[1], [0], [0], [1], [0, 0, 1, 1], [], []>} : vector<64x128xbf16>, vector<128x128xbf16>, vector<64x128xf32> -> vector<64x128xf32>
    %127 = arith.addf %120, %126 : vector<64x128xf32>
    %c1_138 = arith.constant 1 : index
    %c2_139 = arith.constant 2 : index
    %c0_140 = arith.constant 0 : index
    %128 = vector.load %arg8[%c1_138, %c2_139, %c0_140] : memref<10x10x128xf32, #tpu.memory_space<vmem>>, vector<8x8x128xf32>
    %129 = vector.shape_cast %128 : vector<8x8x128xf32> to vector<64x128xf32>
    %130 = arith.truncf %129 : vector<64x128xf32> to vector<64x128xbf16>
    %c5_141 = arith.constant 5 : index
    %c0_142 = arith.constant 0 : index
    %c0_143 = arith.constant 0 : index
    %131 = vector.load %arg4[%c5_141, %c0_142, %c0_143] : memref<9x128x128xbf16, #tpu.memory_space<vmem>>, vector<1x128x128xbf16>
    %132 = vector.shape_cast %131 : vector<1x128x128xbf16> to vector<128x128xbf16>
    %cst_144 = arith.constant dense<0.000000e+00> : vector<64x128xf32>
    %133 = tpu.matmul %130, %132, %cst_144 {dimension_numbers = #tpu.dot_dimension_numbers<[1], [0], [0], [1], [0, 0, 1, 1], [], []>} : vector<64x128xbf16>, vector<128x128xbf16>, vector<64x128xf32> -> vector<64x128xf32>
    %134 = arith.addf %127, %133 : vector<64x128xf32>
    %c2_145 = arith.constant 2 : index
    %c0_146 = arith.constant 0 : index
    %c0_147 = arith.constant 0 : index
    %135 = vector.load %arg8[%c2_145, %c0_146, %c0_147] : memref<10x10x128xf32, #tpu.memory_space<vmem>>, vector<8x8x128xf32>
    %136 = vector.shape_cast %135 : vector<8x8x128xf32> to vector<64x128xf32>
    %137 = arith.truncf %136 : vector<64x128xf32> to vector<64x128xbf16>
    %c6_148 = arith.constant 6 : index
    %c0_149 = arith.constant 0 : index
    %c0_150 = arith.constant 0 : index
    %138 = vector.load %arg4[%c6_148, %c0_149, %c0_150] : memref<9x128x128xbf16, #tpu.memory_space<vmem>>, vector<1x128x128xbf16>
    %139 = vector.shape_cast %138 : vector<1x128x128xbf16> to vector<128x128xbf16>
    %cst_151 = arith.constant dense<0.000000e+00> : vector<64x128xf32>
    %140 = tpu.matmul %137, %139, %cst_151 {dimension_numbers = #tpu.dot_dimension_numbers<[1], [0], [0], [1], [0, 0, 1, 1], [], []>} : vector<64x128xbf16>, vector<128x128xbf16>, vector<64x128xf32> -> vector<64x128xf32>
    %141 = arith.addf %134, %140 : vector<64x128xf32>
    %c2_152 = arith.constant 2 : index
    %c1_153 = arith.constant 1 : index
    %c0_154 = arith.constant 0 : index
    %142 = vector.load %arg8[%c2_152, %c1_153, %c0_154] : memref<10x10x128xf32, #tpu.memory_space<vmem>>, vector<8x8x128xf32>
    %143 = vector.shape_cast %142 : vector<8x8x128xf32> to vector<64x128xf32>
    %144 = arith.truncf %143 : vector<64x128xf32> to vector<64x128xbf16>
    %c7_155 = arith.constant 7 : index
    %c0_156 = arith.constant 0 : index
    %c0_157 = arith.constant 0 : index
    %145 = vector.load %arg4[%c7_155, %c0_156, %c0_157] : memref<9x128x128xbf16, #tpu.memory_space<vmem>>, vector<1x128x128xbf16>
    %146 = vector.shape_cast %145 : vector<1x128x128xbf16> to vector<128x128xbf16>
    %cst_158 = arith.constant dense<0.000000e+00> : vector<64x128xf32>
    %147 = tpu.matmul %144, %146, %cst_158 {dimension_numbers = #tpu.dot_dimension_numbers<[1], [0], [0], [1], [0, 0, 1, 1], [], []>} : vector<64x128xbf16>, vector<128x128xbf16>, vector<64x128xf32> -> vector<64x128xf32>
    %148 = arith.addf %141, %147 : vector<64x128xf32>
    %c2_159 = arith.constant 2 : index
    %c2_160 = arith.constant 2 : index
    %c0_161 = arith.constant 0 : index
    %149 = vector.load %arg8[%c2_159, %c2_160, %c0_161] : memref<10x10x128xf32, #tpu.memory_space<vmem>>, vector<8x8x128xf32>
    %150 = vector.shape_cast %149 : vector<8x8x128xf32> to vector<64x128xf32>
    %151 = arith.truncf %150 : vector<64x128xf32> to vector<64x128xbf16>
    %c8_162 = arith.constant 8 : index
    %c0_163 = arith.constant 0 : index
    %c0_164 = arith.constant 0 : index
    %152 = vector.load %arg4[%c8_162, %c0_163, %c0_164] : memref<9x128x128xbf16, #tpu.memory_space<vmem>>, vector<1x128x128xbf16>
    %153 = vector.shape_cast %152 : vector<1x128x128xbf16> to vector<128x128xbf16>
    %cst_165 = arith.constant dense<0.000000e+00> : vector<64x128xf32>
    %154 = tpu.matmul %151, %153, %cst_165 {dimension_numbers = #tpu.dot_dimension_numbers<[1], [0], [0], [1], [0, 0, 1, 1], [], []>} : vector<64x128xbf16>, vector<128x128xbf16>, vector<64x128xf32> -> vector<64x128xf32>
    %155 = arith.addf %148, %154 : vector<64x128xf32>
    %c0_166 = arith.constant 0 : index
    %c0_167 = arith.constant 0 : index
    %156 = vector.load %arg5[%c0_166, %c0_167] : memref<1x128xf32, #tpu.memory_space<vmem>>, vector<1x128xf32>
    %157 = vector.broadcast %156 : vector<1x128xf32> to vector<64x128xf32>
    %158 = arith.addf %155, %157 : vector<64x128xf32>
    %cst_168 = arith.constant 0.000000e+00 : f32
    %159 = vector.broadcast %cst_168 : f32 to vector<64x128xf32>
    %160 = arith.maximumf %158, %159 : vector<64x128xf32>
    %161 = vector.shape_cast %160 : vector<64x128xf32> to vector<8x8x128xf32>
    %162 = vector.extract_strided_slice %161 {offsets = [0, 0, 0], sizes = [8, 8, 8], strides = [1, 1, 1]} : vector<8x8x128xf32> to vector<8x8x8xf32>
    %c0_169 = arith.constant 0 : index
    %c0_170 = arith.constant 0 : index
    %c0_171 = arith.constant 0 : index
    %c0_172 = arith.constant 0 : index
    %163 = vector.load %arg6[%c0_169, %c0_170, %c0_171, %c0_172] : memref<1x8x8x8xf32, #tpu.memory_space<vmem>>, vector<1x8x8x8xf32>
    %164 = vector.shape_cast %163 : vector<1x8x8x8xf32> to vector<8x8x8xf32>
    %165 = vector.shape_cast %162 : vector<8x8x8xf32> to vector<1x8x8x8xf32>
    tpu.vector_store %arg6[%c0_169, %c0_170, %c0_171, %c0_172], %165 {strides = array<i32>} : memref<1x8x8x8xf32, #tpu.memory_space<vmem>>, vector<1x8x8x8xf32>,
    return
  }
  func.func @transform_0(%arg0: i32) -> (i32, i32, i32, i32, i32) {
    %c0_i32 = arith.constant 0 : i32
    %c0_i32_0 = arith.constant 0 : i32
    %c0_i32_1 = arith.constant 0 : i32
    %c0_i32_2 = arith.constant 0 : i32
    %c0_i32_3 = arith.constant 0 : i32
    return %arg0, %c0_i32, %c0_i32_0, %c0_i32_1, %c0_i32_2 : i32, i32, i32, i32, i32
  }
  func.func @transform_1(%arg0: i32) -> (i32, i32, i32) {
    %c0_i32 = arith.constant 0 : i32
    %c0_i32_0 = arith.constant 0 : i32
    %c0_i32_1 = arith.constant 0 : i32
    %c0_i32_2 = arith.constant 0 : i32
    return %c0_i32, %c0_i32_0, %c0_i32_1 : i32, i32, i32
  }
  func.func @transform_2(%arg0: i32) -> (i32, i32) {
    %c0_i32 = arith.constant 0 : i32
    %c0_i32_0 = arith.constant 0 : i32
    %c0_i32_1 = arith.constant 0 : i32
    return %c0_i32, %c0_i32_0 : i32, i32
  }
  func.func @transform_3(%arg0: i32) -> (i32, i32, i32) {
    %c0_i32 = arith.constant 0 : i32
    %c0_i32_0 = arith.constant 0 : i32
    %c0_i32_1 = arith.constant 0 : i32
    %c0_i32_2 = arith.constant 0 : i32
    return %c0_i32, %c0_i32_0, %c0_i32_1 : i32, i32, i32
  }
  func.func @transform_4(%arg0: i32) -> (i32, i32) {
    %c0_i32 = arith.constant 0 : i32
    %c0_i32_0 = arith.constant 0 : i32
    %c0_i32_1 = arith.constant 0 : i32
    return %c0_i32, %c0_i32_0 : i32, i32
  }
  func.func @transform_5(%arg0: i32) -> (i32, i32, i32, i32) {
    %c0_i32 = arith.constant 0 : i32
    %c0_i32_0 = arith.constant 0 : i32
    %c0_i32_1 = arith.constant 0 : i32
    %c0_i32_2 = arith.constant 0 : i32
    return %arg0, %c0_i32, %c0_i32_0, %c0_i32_1 : i32, i32, i32, i32
  }
}

</mosaic_0001>

<bundles_post_ra>
// kernel: down_forward.1
= control target key start
LH: loop header
LB: loop body
LE: loop exit
PB: predicated region body
PF: predicated region fallthrough
CT: control target
= control target key end

     0   :  { %10 = vsyncpa [#allocation5], 0  ;;  %s4680_s0 = inlined_call_operand.hbm [shape: f32[2,8,2,8,8], index: 0, kind: input, shape index: {}]   ;;  %s4681_s1 = inlined_call_operand.hbm [shape: bf16[9,4,128], index: 1, kind: input, shape index: {}]   ;;  %s4682_s2 = inlined_call_operand.hbm [shape: f32[1,128], index: 2, kind: input, shape index: {}]   ;;  %s4683_s3 = inlined_call_operand.hbm [shape: bf16[9,128,128], index: 3, kind: input, shape index: {}]   ;;  %s4684_s4 = inlined_call_operand.hbm [shape: f32[1,128], index: 4, kind: input, shape index: {}]   ;;  %s4685_s5 = inlined_call_operand.hbm [shape: f32[2,8,8,8], index: 5, kind: output, shape index: {}]  }
   0x1   :  { %12 = vsyncpa [#allocation5 + $0x1], 0 }
   0x2   :  { %13 = vsyncpa [#allocation8], 0 }
   0x3   :  { %14 = vsyncpa [#allocation11], 0 }
   0x4   :  { %15 = vsyncpa [#allocation6], 0 }
   0x5   :  { %17 = vsyncpa [#allocation6 + $0x1], 0  ;;  %s4038_s18 = smov 0   ;;  %s4040_s19 = smov 0  }
   0x6   :  { %s4042_s20 = smov 0   ;;  %s4044_s21 = smov 0  }
   0x7 LB: > { %s4059_s22 = sadd.s32 4294967295, %s3990_s21   ;;  %s2851_s23 = sadd.s32 4294967294, %s3990_s21   ;;  %s3990_s21 = sphi %s4044_s21, %s4708_s21   ;;  %s3986_s20 = sphi %s4042_s20, %s4707_s20   ;;  %s3982_s19 = sphi %s4040_s19, %s4706_s19   ;;  %s3978_s18 = sphi %s4038_s18, %s4705_s18  }
   0x8   : > { %p43_p0 = scmp.ne.s32.totalorder %s3982_s19, %s3978_s18  ;;  %p4686_p1 = scmp.eq.s32.totalorder %s4059_s22, 0 }
   0x9   : > { %p157_p3 = scmp.eq.s32.totalorder %s2851_s23, 1  ;;  %p2852_p5 = scmp.ge.s32.totalorder %s3990_s21, 1 }
   0xa   : > { %p4068_p4 = por %p4686_p1, %p43_p0  ;;  %p164_p7 = scmp.lt.s32.totalorder %s3990_s21, 3 }
   0xb   : > { %p4073_p6 = por %p157_p3, %p43_p0  ;;  %s3992_s27 = smov [#allocation7]  }
   0xc   : > { %s4689_s24 = scalar_select %p4068_p4, 1, 0 }
   0xd   : > { %s4690_s25 = scalar_select %p4073_p6, 1, 0 }
   0xe   : > { %p4078_p8 = pnand %p2852_p5, %p164_p7  ;;  %s176_s28 = sshll.u32 %s3992_s27, 4  ;;  %s4082_s28 = int_to_ptr.vmem [resolvable:$true] %s176_s28 }
   0xf   : > { %s3993_s30 = smov [#allocation10]   ;;  %s3774_s9 = scalar_lea.hbm %s4681_s1, 288 }
  0x10   : > { %s4691_s26 = scalar_select %p4078_p8, 1, 0 }
  0x11   : > { %p3625_p9 = pneg %p4078_p8  ;;  %s200_s6 = sshll.u32 %s3993_s30, 4  ;;  %s4093_s6 = int_to_ptr.vmem [resolvable:$true] %s200_s6 }
  0x12   : > { %p3775_p12 = scmp.ne.s32.totalorder %s4681_s1, %s3774_s9  ;;  %p3781_p5 = scmp.lt.u32.totalorder %s3774_s9, %s4681_s1 }
  0x13   : > { %p4089_p11 = pnand %p3625_p9, %p4686_p1 }
  0x15   : > { %p4103_p13 = pneg %p4089_p11 }
  0x17   : > { %p3777_p0 = pnand %p4103_p13, %p3775_p12 }
  0x19   : > { %p3778_p3 = pneg %p3777_p0 }
  0x1b   : > { %p3783_p7 = pnand %p3781_p5, %p3778_p3 }
  0x1d   : > { %3786 = shalt.err (!%p3783_p7)
}
  0x1e   : > { %s3787_s15 = scalar_lea.vmem %s4082_s28, 288  ;;  %p3795_p2 = scmp.lt.s32.totalorder %s4082_s28, %s4082_s28 }
  0x1f   : > { %p3788_p9 = scmp.ne.s32.totalorder %s4082_s28, %s3787_s15  ;;  %p3796_p6 = scmp.lt.s32.totalorder %s3787_s15, %s3787_s15 }
  0x21   : > { %p3790_p10 = pnand %p3788_p9, %p4103_p13  ;;  %p3797_p12 = por %p3796_p6, %p3795_p2 }
  0x23   : > { %p3791_p1 = pneg %p3790_p10 }
  0x25   : > { %p3798_p0 = pnand %p3797_p12, %p3791_p1 }
  0x27   : > { %3801 = shalt.err (!%p3798_p0)
}
  0x28   : > { %s3994_s16 = smov 32   ;;  %s3995_s17 = smov 2  }
  0x29   : > { %3628 = dma.hbm_to_vmem [thread:$0]  (!%p4089_p11), %s4681_s1, 288, %s4082_s28, [#allocation8], %s3994_s16, %s3994_s16, %s3995_s17  }
  0x2a   : > { %s3802_s8 = scalar_lea.hbm %s4683_s3, 9216 }
  0x2b   : > { %p3803_p2 = scmp.ne.s32.totalorder %s4683_s3, %s3802_s8  ;;  %p3809_p10 = scmp.lt.u32.totalorder %s3802_s8, %s4683_s3 }
  0x2d   : > { %p3805_p1 = pnand %p3803_p2, %p4103_p13 }
  0x2f   : > { %p3806_p6 = pneg %p3805_p1 }
  0x31   : > { %p3811_p3 = pnand %p3809_p10, %p3806_p6 }
  0x33   : > { %3814 = shalt.err (!%p3811_p3)
}
  0x34   : > { %s3815_s28 = scalar_lea.vmem %s4093_s6, 9216  ;;  %p3823_p12 = scmp.lt.s32.totalorder %s4093_s6, %s4093_s6 }
  0x35   : > { %p3816_p5 = scmp.ne.s32.totalorder %s4093_s6, %s3815_s28  ;;  %p3824_p0 = scmp.lt.s32.totalorder %s3815_s28, %s3815_s28 }
  0x37   : > { %p3818_p7 = pnand %p3816_p5, %p4103_p13  ;;  %p3825_p2 = por %p3824_p0, %p3823_p12 }
  0x39   : > { %p3819_p9 = pneg %p3818_p7 }
  0x3b   : > { %p3826_p1 = pnand %p3825_p2, %p3819_p9 }
  0x3d   : > { %3829 = shalt.err (!%p3826_p1)
}
  0x3e   : > { %s3996_s14 = smov 64   ;;  %s3997_s15 = smov 4  }
  0x3f   : > { %3634 = dma.hbm_to_vmem [thread:$0]  (!%p4089_p11), %s4683_s3, 9216, %s4093_s6, [#allocation11], %s3996_s14, %s3996_s14, %s3997_s15  }
  0x40   : > { %s3998_s23 = smov [#allocation9]   ;;  %s3999_s30 = smov [#allocation12]  }
  0x41   : > { %s190_s27 = sshll.u32 %s3998_s23, 4  ;;  %s214_s7 = sshll.u32 %s3999_s30, 4  ;;  %s191_s27 = int_to_ptr.vmem [resolvable:$true] %s190_s27  ;;  %s4147_s7 = int_to_ptr.vmem [resolvable:$true] %s214_s7 }
  0x42   : > { %s3830_s10 = scalar_lea.hbm %s4682_s2, 16 }
  0x43   : > { %p3831_p6 = scmp.ne.s32.totalorder %s4682_s2, %s3830_s10  ;;  %p3837_p5 = scmp.lt.u32.totalorder %s3830_s10, %s4682_s2 }
  0x45   : > { %p3833_p10 = pnand %p3831_p6, %p4103_p13 }
  0x47   : > { %p3834_p3 = pneg %p3833_p10 }
  0x49   : > { %p3839_p7 = pnand %p3837_p5, %p3834_p3 }
  0x4b   : > { %3842 = shalt.err (!%p3839_p7)
}
  0x4c   : > { %s3843_s14 = scalar_lea.vmem %s191_s27, 16  ;;  %s3850_s15 = scalar_lea.vmem %s191_s27, 32 }
  0x4d   : > { %p3844_p9 = scmp.ne.s32.totalorder %s191_s27, %s3843_s14  ;;  %p3851_p2 = scmp.lt.s32.totalorder %s191_s27, %s191_s27 }
  0x4e   : > { %p3852_p1 = scmp.lt.s32.totalorder %s3850_s15, %s3843_s14 }
  0x4f   : > { %p3846_p12 = pnand %p3844_p9, %p4103_p13 }
  0x50   : > { %p3853_p4 = por %p3852_p1, %p3851_p2 }
  0x51   : > { %p3847_p0 = pneg %p3846_p12 }
  0x53   : > { %p3854_p8 = pnand %p3853_p4, %p3847_p0 }
  0x55   : > { %3857 = shalt.err (!%p3854_p8)
}
  0x56   : > { %3631 = dma.hbm_to_vmem [thread:$0]  (!%p4089_p11), %s4682_s2, 16, %s191_s27, [#allocation8]  }
  0x57   : > { %s3858_s8 = scalar_lea.hbm %s4684_s4, 16 }
  0x58   : > { %p3859_p6 = scmp.ne.s32.totalorder %s4684_s4, %s3858_s8  ;;  %p3865_p4 = scmp.lt.u32.totalorder %s3858_s8, %s4684_s4 }
  0x5a   : > { %p3861_p10 = pnand %p3859_p6, %p4103_p13 }
  0x5c   : > { %p3862_p3 = pneg %p3861_p10 }
  0x5e   : > { %p3867_p8 = pnand %p3865_p4, %p3862_p3 }
  0x60   : > { %3870 = shalt.err (!%p3867_p8)
}
  0x61   : > { %s3871_s27 = scalar_lea.vmem %s4147_s7, 16  ;;  %s3878_s28 = scalar_lea.vmem %s4147_s7, 32 }
  0x62   : > { %p3872_p5 = scmp.ne.s32.totalorder %s4147_s7, %s3871_s27  ;;  %p3879_p12 = scmp.lt.s32.totalorder %s4147_s7, %s4147_s7 }
  0x63   : > { %p3880_p0 = scmp.lt.s32.totalorder %s3878_s28, %s3871_s27 }
  0x64   : > { %p3874_p7 = pnand %p3872_p5, %p4103_p13 }
  0x65   : > { %p3881_p2 = por %p3880_p0, %p3879_p12 }
  0x66   : > { %p3875_p9 = pneg %p3874_p7 }
  0x68   : > { %p3882_p1 = pnand %p3881_p2, %p3875_p9 }
  0x6a   : > { %3885 = shalt.err (!%p3882_p1)
}
  0x6b   : > { %3637 = dma.hbm_to_vmem [thread:$0]  (!%p4089_p11), %s4684_s4, 16, %s4147_s7, [#allocation11]  }
  0x6c   : > { %s4192_s12 = sadd.s32 1, %s3990_s21   ;;  %s30_s15 = sadd.s32 1, %s3986_s20 }
  0x6d   : > { %s27_s29 = ssub.s32 %s3990_s21, %s4192_s12  ;;  %p37_p6 = scmp.ne.s32.totalorder %s3986_s20, %s3982_s19 }
  0x6e   : > { %p28_p13 = scmp.eq.s32.totalorder %s27_s29, 0  ;;  %p38_p10 = scmp.eq.s32.totalorder %s3990_s21, 0 }
  0x6f   : > { %p4694_p4 = scmp.eq.s32.totalorder %s4059_s22, 1  ;;  %p3650_p5 = scmp.lt.s32.totalorder %s3990_s21, 2 }
  0x70   : > { %s4201_s16 = scalar_select %p28_p13, %s3986_s20, %s30_s15  }
  0x71   : > { %p39_p3 = por %p38_p10, %p37_p6  ;;  %p4205_p8 = por %p4694_p4, %p37_p6 }
  0x72   : > { %s225_s23 = sand.u32 1, %s3986_s20   ;;  %s2991_s7 = sshll.u32 %s3990_s21, 11 }
  0x73   : > { %s2858_s30 = sshll.u32 %s225_s23, 7  ;;  %s4215_s10 = scalar_lea.hbm %s4680_s0, %s2991_s7 }
  0x74   : > { %s229_s11 = scalar_lea.vmem [#allocation4], %s2858_s30  ;;  %p4219_p11 = pnand %p3650_p5, %p39_p3 }
  0x75   : > { %s236_s13 = sshll.u32 %s229_s11, 4  ;;  %s4223_s28 = scalar_lea.sflag [#allocation5], %s225_s23  ;;  %s4217_s13 = int_to_ptr.vmem [resolvable:$true] %s236_s13 }
  0x76   : > { %s3886_s6 = scalar_lea.hbm %s4215_s10, 2048  ;;  %p3888_p9 = pneg %p4219_p11 }
  0x77   : > { %p3887_p7 = scmp.ne.s32.totalorder %s4215_s10, %s3886_s6  ;;  %s3891_s15 = scalar_lea.hbm %s4680_s0, 4096 }
  0x78   : > { %p3892_p2 = scmp.lt.u32.totalorder %s4215_s10, %s4680_s0  ;;  %p3893_p1 = scmp.lt.u32.totalorder %s3891_s15, %s3886_s6 }
  0x79   : > { %p3889_p12 = pnand %p3888_p9, %p3887_p7  ;;  %p3895_p6 = scmp.lt.u32.totalorder %s3886_s6, %s4215_s10 }
  0x7a   : > { %p3894_p13 = por %p3893_p1, %p3892_p2 }
  0x7b   : > { %p3890_p0 = pneg %p3889_p12 }
  0x7c   : > { %p3896_p10 = por %p3895_p6, %p3894_p13 }
  0x7e   : > { %p3897_p3 = pnand %p3896_p10, %p3890_p0 }
  0x80   : > { %3900 = shalt.err (!%p3897_p3)
}
  0x81   : > { %s3901_s23 = scalar_lea.vmem %s4217_s13, 2048  ;;  %s4000_s8 = smov [#allocation4]  }
  0x82   : > { %p3902_p4 = scmp.ne.s32.totalorder %s4217_s13, %s3901_s23  ;;  %s3906_s9 = sshll.u32 %s4000_s8, 4  ;;  %s3907_s9 = int_to_ptr.vmem [resolvable:$false] %s3906_s9 }
  0x83   : > { %s3908_s11 = scalar_lea.vmem %s3907_s9, 4096  ;;  %p3909_p12 = scmp.lt.s32.totalorder %s4217_s13, %s3907_s9 }
  0x84   : > { %p3904_p5 = pnand %p3902_p4, %p3888_p9  ;;  %p3910_p2 = scmp.lt.s32.totalorder %s3908_s11, %s3901_s23 }
  0x86   : > { %p3905_p7 = pneg %p3904_p5  ;;  %p3911_p1 = por %p3910_p2, %p3909_p12 }
  0x88   : > { %p3912_p13 = pnand %p3911_p1, %p3905_p7 }
  0x8a   : > { %3915 = shalt.err (!%p3912_p13)
}
  0x8b   : > { %s4001_s6 = smov 128   ;;  %s4002_s14 = smov 8  }
  0x8c   : > { %3641 = dma.hbm_to_vmem [thread:$0]  (!%p4219_p11), %s4215_s10, 2048, %s4217_s13, %s4223_s28, %s4001_s6, %s4001_s6, %s4002_s14  }
  0x8d   : > { %p4697_p9 = scmp.ne.s32.totalorder %s4691_s26, 0 }
  0x8e   : > { %s4254_s29 = sand.u32 (!%p4697_p9), 1, %s3982_s19   ;;  %p4698_p0 = scmp.ne.s32.totalorder (!%p4697_p9), %s4689_s24, 0 }
  0x8f   : > { %248 = sbr.rel (%p4697_p9) target bundleno = 1079 (0x437), region = 40  ;;  %s2862_s15 = sshll.u32 (!%p4697_p9), %s4254_s29, 7 }
  0x90   : > { %s251_s30 = scalar_lea.sflag (!%p4697_p9), [#allocation5], %s4254_s29  ;;  %s4258_s7 = scalar_lea.vmem (!%p4697_p9), [#allocation4], %s2862_s15 }
  0x96   : > { %3961 = dma.done.wait (%p4698_p0), %s251_s30, 2048  }
  0x97   : > { %3963 = vsyncadd (%p4698_p0), %s251_s30, 4294965248  ;;  %p4699_p11 = scmp.eq.s32.totalorder %s4059_s22, 0 }
  0x99   : > { %3965 = dma.done.wait (%p4699_p11), [#allocation8], 304   ;;  %p4700_p6 = pmov %p4699_p11 }
  0x9b   : > { %3967 = vsyncadd (%p4700_p6), [#allocation8], 4294966992  ;;  %p4701_p10 = pmov %p4700_p6 }
  0x9c   : > { %p4702_p3 = pmov %p4700_p6 }
  0x9d   : > { %3969 = dma.done.wait (%p4701_p10), [#allocation11], 9232  }
  0x9e   : > { %3971 = vsyncadd (%p4702_p3), [#allocation11], 4294958064  ;;  %vm298_vm0 = vcmask 31744   ;;  %vm300_vm1 = vcmask 25600   ;;  %v4003_v0 = vmov 0.0   ;;  %vm305_vm2 = vcmask 24576  }
  0x9f   : > { %299 = vst.msk [vmem:[#allocation2] sm:$0xff] %vm298_vm0, %v4003_v0  ;;  %303 = vst.msk [vmem:[#allocation2 + $0x90] sm:$0xff] %vm298_vm0, %v4003_v0  ;;  %v353_v1 = vld [vmem:[%s4258_s7 + $0x20] sm:$0xff]  ;;  %v2870_v2 = vld [vmem:[%s4258_s7 + $0x28] sm:$0xff]  ;;  %s4004_s24 = smov 124   ;;  %vm464_vm3 = vcmask 1041408  }
  0xa0   : > { %301 = vst.msk [vmem:[#allocation2 + $0x8] sm:$0x3] %vm300_vm1, %v4003_v0  ;;  %304 = vst.msk [vmem:[#allocation2 + $0x98] sm:$0x3] %vm300_vm1, %v4003_v0  ;;  %v351_v3 = vld [vmem:[%s4258_s7] sm:$0xff]  ;;  %v370_v4 = vmax.f32 %v353_v1, %v2870_v2  ;;  %v2868_v5 = vld [vmem:[%s4258_s7 + $0x8] sm:$0xff] }
  0xa1   : > { %326 = vst [vmem:[#allocation3] sm:$0xff] %v4003_v0  ;;  %327 = vst [vmem:[#allocation3 + $0x8] sm:$0x3] %v4003_v0  ;;  %v354_v6 = vld [vmem:[%s4258_s7 + $0x30] sm:$0xff]  ;;  %v2871_v7 = vld [vmem:[%s4258_s7 + $0x38] sm:$0xff]  ;;  %v368_v8 = vmax.f32 %v351_v3, %v2868_v5  ;;  %s2867_s26 = sshll.u32 %s4254_s29, 6 }
  0xa2   : > { %329 = vst [vmem:[#allocation3 + $0x90] sm:$0xff] %v4003_v0  ;;  %330 = vst [vmem:[#allocation3 + $0x98] sm:$0x3] %v4003_v0  ;;  %v352_v9 = vld [vmem:[%s4258_s7 + $0x10] sm:$0xff]  ;;  %v2869_v10 = vld [vmem:[%s4258_s7 + $0x18] sm:$0xff]  ;;  %388 = vrot.lane.b32.xlu1 %v370_v4, %s4004_s24  ;;  %v371_v11 = vmax.f32 %v354_v6, %v2871_v7  ;;  %vm2717_vm4 = vcmask 64512  }
  0xa3   : > { %332 = vst [vmem:[#allocation3 + $0x10] sm:$0x1] %v4003_v0  ;;  %333 = vst [vmem:[#allocation3 + $0x20] sm:$0x1] %v4003_v0  ;;  %384 = vrot.lane.b32.xlu0 %v368_v8, %s4004_s24  ;;  %v369_v12 = vmax.f32 %v352_v9, %v2869_v10  ;;  %v356_v13 = vld [vmem:[%s4258_s7 + $0x50] sm:$0xff]  ;;  %v2873_v14 = vld [vmem:[%s4258_s7 + $0x58] sm:$0xff] }
  0xa4   : > { %334 = vst [vmem:[#allocation3 + $0x30] sm:$0x1] %v4003_v0  ;;  %335 = vst [vmem:[#allocation3 + $0x40] sm:$0x1] %v4003_v0  ;;  %v355_v15 = vld [vmem:[%s4258_s7 + $0x40] sm:$0xff]  ;;  %v2872_v16 = vld [vmem:[%s4258_s7 + $0x48] sm:$0xff]  ;;  %v373_v22 = vmax.f32 %v356_v13, %v2873_v14 }
  0xa5   : > { %336 = vst [vmem:[#allocation3 + $0x50] sm:$0x1] %v4003_v0  ;;  %337 = vst [vmem:[#allocation3 + $0x60] sm:$0x1] %v4003_v0  ;;  %v451_v17 = vld [vmem:[#allocation7 + $0x2] sm:$0x3]  ;;  %v372_v25 = vmax.f32 %v355_v15, %v2872_v16 }
  0xa6   : > { %338 = vst [vmem:[#allocation3 + $0x70] sm:$0x1] %v4003_v0  ;;  %339 = vst [vmem:[#allocation3 + $0x80] sm:$0x1] %v4003_v0  ;;  %v358_v18 = vld [vmem:[%s4258_s7 + $0x70] sm:$0xff]  ;;  %v2875_v19 = vld [vmem:[%s4258_s7 + $0x78] sm:$0xff]  ;;  %3596 = vmatprep.subr.msk.bf16.mxu0 %vm464_vm3, %v451_v17  ;;  %390 = vrot.lane.b32.xlu1 %v371_v11, %s4004_s24 }
  0xa7   : > { %342 = vst [vmem:[#allocation3 + $0x19] sm:$0x1] %v4003_v0  ;;  %343 = vst [vmem:[#allocation3 + $0x29] sm:$0x1] %v4003_v0  ;;  %v466_v20 = vsel %vm464_vm3, %v451_v17, 0  ;;  %v357_v23 = vld [vmem:[%s4258_s7 + $0x60] sm:$0xff]  ;;  %386 = vrot.lane.b32.xlu0 %v369_v12, %s4004_s24  ;;  %v375_v26 = vmax.f32 %v358_v18, %v2875_v19 }
  0xa8   : > { %344 = vst [vmem:[#allocation3 + $0x39] sm:$0x1] %v4003_v0  ;;  %345 = vst [vmem:[#allocation3 + $0x49] sm:$0x1] %v4003_v0  ;;  %v437_v21 = vld [vmem:[#allocation7] sm:$0x3]  ;;  %3147 = vmatpush3.bf16.msra.mxu0 %v466_v20 }
  0xa9   : > { %346 = vst [vmem:[#allocation3 + $0x59] sm:$0x1] %v4003_v0  ;;  %347 = vst [vmem:[#allocation3 + $0x69] sm:$0x1] %v4003_v0  ;;  %v2874_v24 = vld [vmem:[%s4258_s7 + $0x68] sm:$0xff]  ;;  %3597 = vmatprep.subr.msk.bf16.mxu0 %vm464_vm3, %v437_v21  ;;  %v546_v50 = vsel %vm464_vm3, %v437_v21, 0 }
  0xaa   : > { %348 = vst [vmem:[#allocation3 + $0x79] sm:$0x1] %v4003_v0  ;;  %349 = vst [vmem:[#allocation3 + $0x89] sm:$0x1] %v4003_v0  ;;  %394 = vrot.lane.b32.xlu1 %v373_v22, %s4004_s24  ;;  %v374_v27 = vmax.f32 %v357_v23, %v2874_v24  ;;  %v438_v39 = vld [vmem:[#allocation2 + $0x1] sm:$0xff]  ;;  %v3703_v61 = vld [vmem:[#allocation10 + $0x80] sm:$0xff]  }
  0xab   : > { %306 = vst.msk [vmem:[#allocation2] sm:$0x1] %vm305_vm2, %v4003_v0  ;;  %316 = vst.msk [vmem:[#allocation2 + $0x9] sm:$0x1] %vm305_vm2, %v4003_v0  ;;  %392 = vrot.lane.b32.xlu0 %v372_v25, %s4004_s24  ;;  %v626_v51 = vld [vmem:[#allocation7 + $0x4] sm:$0x3]  ;;  %3284 = vmatprep.subr.bf16.mxu1 %v3703_v61 }
  0xac   : > { %307 = vst.msk [vmem:[#allocation2 + $0x10] sm:$0x1] %vm305_vm2, %v4003_v0  ;;  %308 = vst.msk [vmem:[#allocation2 + $0x20] sm:$0x1] %vm305_vm2, %v4003_v0  ;;  %v3705_v62 = vld [vmem:[#allocation10 + $0x88] sm:$0xff]   ;;  %3285 = vmatpush3.bf16.msra.mxu1 %v3703_v61  ;;  %v3707_v2 = vld [vmem:[#allocation10 + $0x90] sm:$0xff]  }
  0xad   : > { %309 = vst.msk [vmem:[#allocation2 + $0x30] sm:$0x1] %vm305_vm2, %v4003_v0  ;;  %310 = vst.msk [vmem:[#allocation2 + $0x40] sm:$0x1] %vm305_vm2, %v4003_v0  ;;  %3286 = vmatprep.subr.bf16.mxu1 %v3705_v62  ;;  %v728_v7 = vld [vmem:[#allocation7 + $0x6] sm:$0x3] }
  0xae   : > { %311 = vst.msk [vmem:[#allocation2 + $0x50] sm:$0x1] %vm305_vm2, %v4003_v0  ;;  %312 = vst.msk [vmem:[#allocation2 + $0x60] sm:$0x1] %vm305_vm2, %v4003_v0  ;;  %398 = vrot.lane.b32.xlu1 %v375_v26, %s4004_s24  ;;  %v742_v19 = vsel %vm464_vm3, %v728_v7, 0  ;;  %v3712_v61 = vld [vmem:[#allocation10 + $0x68] sm:$0xff]  }
  0xaf   : > { %313 = vst.msk [vmem:[#allocation2 + $0x70] sm:$0x1] %vm305_vm2, %v4003_v0  ;;  %314 = vst.msk [vmem:[#allocation2 + $0x80] sm:$0x1] %vm305_vm2, %v4003_v0  ;;  %396 = vrot.lane.b32.xlu0 %v374_v27, %s4004_s24  ;;  %s296_s10 = scalar_lea.vmem [#allocation13], %s2867_s26  ;;  %s2992_s13 = sshll.u32 %s4059_s22, 10 }
  0xb0   : > { %317 = vst.msk [vmem:[#allocation2 + $0x19] sm:$0x1] %vm305_vm2, %v4003_v0  ;;  %318 = vst.msk [vmem:[#allocation2 + $0x29] sm:$0x1] %vm305_vm2, %v4003_v0  ;;  %3287 = vmatpush3.bf16.msra.mxu1 %v3705_v62  ;;  %v3711_v62 = vld [vmem:[#allocation10 + $0xa0] sm:$0xff]   ;;  %s2740_s27 = sshll.u32 %s296_s10, 4  ;;  %s4631_s8 = scalar_lea.hbm %s4685_s5, %s2992_s13  ;;  %s4633_s27 = int_to_ptr.vmem [resolvable:$true] %s2740_s27 }
  0xb1   : > { %319 = vst.msk [vmem:[#allocation2 + $0x39] sm:$0x1] %vm305_vm2, %v4003_v0  ;;  %320 = vst.msk [vmem:[#allocation2 + $0x49] sm:$0x1] %vm305_vm2, %v4003_v0  ;;  %3288 = vmatprep.subr.bf16.mxu1 %v3707_v2  ;;  %s2727_s22 = scalar_lea.sflag [#allocation6], %s4254_s29  ;;  %s3916_s9 = scalar_lea.vmem %s4633_s27, 1024 }
  0xb2   : > { %321 = vst.msk [vmem:[#allocation2 + $0x59] sm:$0x1] %vm305_vm2, %v4003_v0  ;;  %322 = vst.msk [vmem:[#allocation2 + $0x69] sm:$0x1] %vm305_vm2, %v4003_v0  ;;  %v425_v55 = vld [vmem:[#allocation2] sm:$0xff]  ;;  %p3917_p4 = scmp.ne.s32.totalorder %s4633_s27, %s3916_s9  ;;  %s4005_s11 = smov [#allocation13]  }
  0xb3   : > { %323 = vst.msk [vmem:[#allocation2 + $0x79] sm:$0x1] %vm305_vm2, %v4003_v0  ;;  %324 = vst.msk [vmem:[#allocation2 + $0x89] sm:$0x1] %vm305_vm2, %v4003_v0  ;;  %v613_v10 = vld [vmem:[#allocation2 + $0x2] sm:$0xff]  ;;  %s3920_s6 = sshll.u32 %s4005_s11, 4  ;;  %s3921_s6 = int_to_ptr.vmem [resolvable:$false] %s3920_s6 }
  0xb4   : > { %325 = vst.msk [vmem:[#allocation2 + $0x99] sm:$0x1] %vm305_vm2, %v4003_v0  ;;  %315 = vst.msk [vmem:[#allocation2 + $0x90] sm:$0x1] %vm305_vm2, %v4003_v0  ;;  %3289 = vmatpush3.bf16.msra.mxu1 %v3707_v2  ;;  %v3715_v2 = vld [vmem:[#allocation10 + $0xb0] sm:$0xff]   ;;  %p3918_p5 = pnand %p3917_p4, %p4205_p8  ;;  %s3922_s14 = scalar_lea.vmem %s3921_s6, 2048 }
  0xb5   : > { %331 = vst [vmem:[#allocation3] sm:$0x1] %v4003_v0  ;;  %340 = vst [vmem:[#allocation3 + $0x90] sm:$0x1] %v4003_v0  ;;  %p3923_p12 = scmp.lt.s32.totalorder %s4633_s27, %s3921_s6  ;;  %p3924_p2 = scmp.lt.s32.totalorder %s3922_s14, %s3916_s9 }
  0xb6   : > { %341 = vst [vmem:[#allocation3 + $0x9] sm:$0x1] %v4003_v0  ;;  %350 = vst [vmem:[#allocation3 + $0x99] sm:$0x1] %v4003_v0  ;;  %p3919_p7 = pneg %p3918_p5 }
  0xb7   : > { %p3925_p1 = por %p3924_p2, %p3923_p12 }
  0xb9   : > { %p3926_p13 = pnand %p3925_p1, %p3919_p7 }
 0x114   : > { %v389_v28 = vpop.permute.xlu1 %388 }
 0x115   : > { %v410_v29 = vmax.f32 %v370_v4, %v389_v28  ;;  %v385_v30 = vpop.permute.xlu0 %384  ;;  %v640_v4 = vsel %vm464_vm3, %v626_v51, 0 }
 0x116   : > { %v408_v31 = vmax.f32 %v368_v8, %v385_v30  ;;  %v3709_v8 = vld [vmem:[#allocation10 + $0x98] sm:$0xff]   ;;  %v932_v30 = vld [vmem:[#allocation7 + $0xa] sm:$0x3] }
 0x117   : > { %419 = vst.msk [vmem:[#allocation2 + $0x31] sm:$0xff] %vm298_vm0, %v410_v29  ;;  %3290 = vmatprep.subr.bf16.mxu1 %v3709_v8 }
 0x118   : > { %417 = vst.msk [vmem:[#allocation2 + $0x11] sm:$0xff] %vm298_vm0, %v408_v31  ;;  %v391_v32 = vpop.permute.xlu1 %390  ;;  %3291 = vmatpush3.bf16.msra.mxu1 %v3709_v8 }
 0x119   : > { %v411_v33 = vmax.f32 %v371_v11, %v391_v32  ;;  %v387_v34 = vpop.permute.xlu0 %386  ;;  %3292 = vmatprep.subr.bf16.mxu1 %v3711_v62 }
 0x11a   : > { %v409_v35 = vmax.f32 %v369_v12, %v387_v34 }
 0x11b   : > { %420 = vst.msk [vmem:[#allocation2 + $0x41] sm:$0xff] %vm298_vm0, %v411_v33 }
 0x11c   : > { %418 = vst.msk [vmem:[#allocation2 + $0x21] sm:$0xff] %vm298_vm0, %v409_v35  ;;  %v395_v36 = vpop.permute.xlu1 %394  ;;  %v946_v35 = vsel %vm464_vm3, %v932_v30, 0  ;;  %3293 = vmatpush3.bf16.msra.mxu1 %v3711_v62 }
 0x11d   : > { %v413_v37 = vmax.f32 %v373_v22, %v395_v36  ;;  %v393_v38 = vpop.permute.xlu0 %392  ;;  %v830_v22 = vld [vmem:[#allocation7 + $0x8] sm:$0x3] }
 0x11e   : > { %v412_v40 = vmax.f32 %v372_v25, %v393_v38  ;;  %v4322_v46 = vld [vmem:[#allocation2 + $0x31] sm:$0xff]  ;;  %v844_v28 = vsel %vm464_vm3, %v830_v22, 0 }
 0x11f   : > { %422 = vst.msk [vmem:[#allocation2 + $0x61] sm:$0xff] %vm298_vm0, %v413_v37  ;;  %v4318_v41 = vld [vmem:[#allocation2 + $0x11] sm:$0xff]  ;;  %v1035_v37 = vld [vmem:[#allocation7 + $0xc] sm:$0x3] }
 0x120   : > { %421 = vst.msk [vmem:[#allocation2 + $0x51] sm:$0xff] %vm298_vm0, %v412_v40  ;;  %v399_v42 = vpop.permute.xlu1 %398  ;;  %v446_v43 = vpack.c.bf16 %v4318_v41, %v438_v39  ;;  %v426_v56 = vld [vmem:[#allocation2 + $0x10] sm:$0xff] }
 0x121   : > { %v415_v44 = vmax.f32 %v375_v26, %v399_v42  ;;  %v397_v45 = vpop.permute.xlu0 %396  ;;  %v433_v60 = vpack.c.bf16 %v426_v56, %v425_v55  ;;  %v428_v0 = vld [vmem:[#allocation2 + $0x30] sm:$0xff]  ;;  %v1049_v42 = vsel %vm464_vm3, %v1035_v37, 0 }
 0x122   : > { %v414_v47 = vmax.f32 %v374_v27, %v397_v45  ;;  %3148 = vmatprep.mubr.msk.bf16.mxu0 %vm298_vm0, %v446_v43  ;;  %v4336_v52 = vld [vmem:[#allocation2 + $0x41] sm:$0xff]  ;;  %v614_v11 = vld [vmem:[#allocation2 + $0x12] sm:$0xff] }
 0x123   : > { %424 = vst.msk [vmem:[#allocation2 + $0x81] sm:$0xff] %vm298_vm0, %v415_v44  ;;  %v4326_v48 = vld [vmem:[#allocation2 + $0x21] sm:$0xff]  ;;  %v621_v14 = vpack.c.bf16 %v614_v11, %v613_v10  ;;  %v616_v16 = vld [vmem:[#allocation2 + $0x32] sm:$0xff]  ;;  %v826_v34 = vpack.c.bf16 %v4336_v52, %v4322_v46  ;;  %v1137_v44 = vld [vmem:[#allocation7 + $0xe] sm:$0x3] }
 0x124   : > { %423 = vst.msk [vmem:[#allocation2 + $0x71] sm:$0xff] %vm298_vm0, %v414_v47  ;;  %v4331_v49 = vpack.c.bf16 %v4322_v46, %v4326_v48  ;;  %v427_v63 = vld [vmem:[#allocation2 + $0x20] sm:$0xff]  ;;  %v825_v33 = vpack.c.bf16 %v4326_v48, %v4318_v41  ;;  %v1151_v47 = vsel %vm464_vm3, %v1137_v44, 0  ;;  %v1239_v48 = vld [vmem:[#allocation7 + $0x10] sm:$0x3] }
 0x125   : > { %v4358_v3 = vpack.c.bf16 %v428_v0, %v427_v63  ;;  %v429_v5 = vld [vmem:[#allocation2 + $0x40] sm:$0xff]  ;;  %v723_v26 = vpack.c.bf16 %v427_v63, %v426_v56  ;;  %v1131_v55 = vld [vmem:[#allocation2 + $0x91] sm:$0xff] }
 0x126   : > { %3149 = vmatmul.mubr.msk.bf16.vlgmr.msra.gmra.mrb[0].mxu0 %vm298_vm0, %v4331_v49  ;;  %v4347_v57 = vld [vmem:[#allocation2 + $0x61] sm:$0xff]  ;;  %v724_v27 = vpack.c.bf16 %v429_v5, %v428_v0 }
 0x127   : > { %3157 = vmatpush3.bf16.msra.mxu0 %v546_v50  ;;  %v4338_v53 = vld [vmem:[#allocation2 + $0x51] sm:$0xff]  ;;  %v431_v12 = vld [vmem:[#allocation2 + $0x60] sm:$0xff] }
 0x128   : > { %v4342_v54 = vpack.c.bf16 %v4338_v53, %v4336_v52  ;;  %3598 = vmatprep.subr.msk.bf16.mxu0 %vm464_vm3, %v626_v51  ;;  %v430_v1 = vld [vmem:[#allocation2 + $0x50] sm:$0xff]  ;;  %v615_v15 = vld [vmem:[#allocation2 + $0x22] sm:$0xff]  ;;  %v827_v36 = vpack.c.bf16 %v4347_v57, %v4338_v53  ;;  %v1253_v52 = vsel %vm464_vm3, %v1239_v48, 0 }
 0x129   : > { %v4361_v6 = vpack.c.bf16 %v430_v1, %v429_v5  ;;  %v618_v17 = vld [vmem:[#allocation2 + $0x52] sm:$0xff]  ;;  %v4373_v18 = vpack.c.bf16 %v616_v16, %v615_v15  ;;  %v617_v20 = vld [vmem:[#allocation2 + $0x42] sm:$0xff]  ;;  %v725_v29 = vpack.c.bf16 %v431_v12, %v430_v1  ;;  %v927_v40 = vpack.c.bf16 %v615_v15, %v614_v11 }
 0x12a   : > { %3152 = vmatprep.mubr.msk.bf16.mxu0 %vm298_vm0, %v4342_v54  ;;  %v4376_v21 = vpack.c.bf16 %v618_v17, %v617_v20  ;;  %v619_v24 = vld [vmem:[#allocation2 + $0x62] sm:$0xff]  ;;  %v928_v41 = vpack.c.bf16 %v617_v20, %v616_v16  ;;  %v1029_v50 = vld [vmem:[#allocation2 + $0x90] sm:$0xff] }
 0x12b   : > { %v4349_v58 = vld [vmem:[#allocation2 + $0x71] sm:$0xff]  ;;  %v722_v31 = vld [vmem:[#allocation2 + $0x80] sm:$0xff]  ;;  %v929_v43 = vpack.c.bf16 %v619_v24, %v618_v17 }
 0x12c   : > { %v4353_v59 = vpack.c.bf16 %v4349_v58, %v4347_v57  ;;  %v432_v9 = vld [vmem:[#allocation2 + $0x70] sm:$0xff]  ;;  %v824_v38 = vld [vmem:[#allocation2 + $0x81] sm:$0xff]  ;;  %v1033_v51 = vpack.c.bf16 %v1029_v50, %v722_v31 }
 0x12d   : > { %v4368_v13 = vpack.c.bf16 %v432_v9, %v431_v12  ;;  %v620_v23 = vld [vmem:[#allocation2 + $0x72] sm:$0xff]  ;;  %v726_v32 = vpack.c.bf16 %v722_v31, %v432_v9  ;;  %v828_v39 = vpack.c.bf16 %v824_v38, %v4349_v58  ;;  %v926_v45 = vld [vmem:[#allocation2 + $0x82] sm:$0xff]  ;;  %v1135_v56 = vpack.c.bf16 %v1131_v55, %v824_v38 }
 0x12e   : > { %3153 = vmatmul.mubr.msk.bf16.gmra.mrb[4].mxu0 %vm298_vm0, %v4353_v59  ;;  %v4383_v25 = vpack.c.bf16 %v620_v23, %v619_v24  ;;  %v930_v46 = vpack.c.bf16 %v926_v45, %v620_v23  ;;  %v3702_v53 = vld [vmem:[#allocation10 + $0x40] sm:$0xff]   ;;  %v3704_v57 = vld [vmem:[#allocation10 + $0x48] sm:$0xff]   ;;  %v3714_v63 = vld [vmem:[#allocation10 + $0x70] sm:$0xff]  }
 0x12f   : > { %3158 = vmatprep.mubr.msk.bf16.mxu0 %vm298_vm0, %v433_v60  ;;  %v3710_v60 = vld [vmem:[#allocation10 + $0x60] sm:$0xff]   ;;  %v3713_v0 = vld [vmem:[#allocation10 + $0xa8] sm:$0xff]   ;;  %v3716_v1 = vld [vmem:[#allocation10 + $0x78] sm:$0xff]  }
 0x130   : > { %3294 = vmatprep.subr.bf16.mxu1 %v3713_v0  ;;  %v4436_v5 = vld [vmem:[#allocation10 + $0xc0] sm:$0xff]   ;;  %v1388_v15 = vld [vmem:[#allocation3 + $0x1] sm:$0xff] }
 0x131   : > { %3295 = vmatpush3.bf16.msra.mxu1 %v3713_v0  ;;  %v3720_v24 = vld [vmem:[#allocation10 + $0x8] sm:$0xff]   ;;  %v3722_v38 = vld [vmem:[#allocation10 + $0x10] sm:$0xff]   ;;  %v3725_v0 = vld [vmem:[#allocation10 + $0xd8] sm:$0xff]  }
 0x132   : > { %3296 = vmatprep.subr.bf16.mxu1 %v3715_v2 }
 0x135   : > { %3297 = vmatpush3.bf16.msra.mxu1 %v3715_v2  ;;  %v3728_v2 = vld [vmem:[#allocation10 + $0x28] sm:$0xff]  }
 0x136   : > { %3159 = vmatmul.mubr.msk.bf16.vlgmr.msra.gmra.mrb[0].mxu0 %vm298_vm0, %v4358_v3 }
 0x137   : > { %3167 = vmatpush3.bf16.msra.mxu0 %v640_v4  ;;  %3162 = vmatprep.mubr.msk.bf16.mxu0 %vm298_vm0, %v4361_v6  ;;  %v3717_v4 = vld [vmem:[#allocation10 + $0xb8] sm:$0xff]  }
 0x138   : > { %3599 = vmatprep.subr.msk.bf16.mxu0 %vm464_vm3, %v728_v7  ;;  %3298 = vmatprep.subr.bf16.mxu1 %v3717_v4 }
 0x139   : > { %3299 = vmatpush3.bf16.msra.mxu1 %v3717_v4  ;;  %v3727_v4 = vld [vmem:[#allocation10 + $0xe0] sm:$0xff]  }
 0x13a   : > { %3308 = vmatprep.subr.bf16.mxu1 %v4436_v5 }
 0x13e   : > { %3163 = vmatmul.mubr.msk.bf16.gmra.mrb[4].mxu0 %vm298_vm0, %v4368_v13 }
 0x13f   : > { %3168 = vmatprep.mubr.msk.bf16.mxu0 %vm298_vm0, %v621_v14 }
 0x146   : > { %3169 = vmatmul.mubr.msk.bf16.vlgmr.msra.gmra.mrb[0].mxu0 %vm298_vm0, %v4373_v18 }
 0x147   : > { %3177 = vmatpush3.bf16.msra.mxu0 %v742_v19  ;;  %3172 = vmatprep.mubr.msk.bf16.mxu0 %vm298_vm0, %v4376_v21 }
 0x148   : > { %3600 = vmatprep.subr.msk.bf16.mxu0 %vm464_vm3, %v830_v22 }
 0x14e   : > { %3173 = vmatmul.mubr.msk.bf16.gmra.mrb[4].mxu0 %vm298_vm0, %v4383_v25 }
 0x14f   : > { %3178 = vmatprep.mubr.msk.bf16.mxu0 %vm298_vm0, %v723_v26 }
 0x156   : > { %3179 = vmatmul.mubr.msk.bf16.vlgmr.msra.gmra.mrb[0].mxu0 %vm298_vm0, %v724_v27 }
 0x157   : > { %3187 = vmatpush3.bf16.msra.mxu0 %v844_v28  ;;  %3182 = vmatprep.mubr.msk.bf16.mxu0 %vm298_vm0, %v725_v29 }
 0x158   : > { %3601 = vmatprep.subr.msk.bf16.mxu0 %vm464_vm3, %v932_v30 }
 0x15e   : > { %3183 = vmatmul.mubr.msk.bf16.gmra.mrb[4].mxu0 %vm298_vm0, %v726_v32 }
 0x15f   : > { %3188 = vmatprep.mubr.msk.bf16.mxu0 %vm298_vm0, %v825_v33  ;;  %v1643_v33 = vld [vmem:[#allocation3 + $0x2] sm:$0xff] }
 0x166   : > { %3189 = vmatmul.mubr.msk.bf16.vlgmr.msra.gmra.mrb[0].mxu0 %vm298_vm0, %v826_v34 }
 0x167   : > { %3197 = vmatpush3.bf16.msra.mxu0 %v946_v35  ;;  %3192 = vmatprep.mubr.msk.bf16.mxu0 %vm298_vm0, %v827_v36 }
 0x168   : > { %3602 = vmatprep.subr.msk.bf16.mxu0 %vm464_vm3, %v1035_v37 }
 0x16e   : > { %3193 = vmatmul.mubr.msk.bf16.gmra.mrb[4].mxu0 %vm298_vm0, %v828_v39 }
 0x16f   : > { %3198 = vmatprep.mubr.msk.bf16.mxu0 %vm298_vm0, %v927_v40 }
 0x176   : > { %3199 = vmatmul.mubr.msk.bf16.vlgmr.msra.gmra.mrb[0].mxu0 %vm298_vm0, %v928_v41 }
 0x177   : > { %3207 = vmatpush3.bf16.msra.mxu0 %v1049_v42  ;;  %3202 = vmatprep.mubr.msk.bf16.mxu0 %vm298_vm0, %v929_v43 }
 0x178   : > { %3603 = vmatprep.subr.msk.bf16.mxu0 %vm464_vm3, %v1137_v44 }
 0x17e   : > { %3203 = vmatmul.mubr.msk.bf16.gmra.mrb[4].mxu0 %vm298_vm0, %v930_v46 }
 0x17f   : > { %3208 = vmatprep.mubr.msk.bf16.mxu0 %vm298_vm0, %v4358_v3  ;;  %v3718_v3 = vld [vmem:[#allocation10] sm:$0xff]  }
 0x186   : > { %3209 = vmatmul.mubr.msk.bf16.vlgmr.msra.gmra.mrb[0].mxu0 %vm298_vm0, %v4361_v6  ;;  %v2912_v6 = vld [vmem:[#allocation9] ss:$0 sm:$0xff] }
 0x187   : > { %3217 = vmatpush3.bf16.msra.mxu0 %v1151_v47  ;;  %3212 = vmatprep.mubr.msk.bf16.mxu0 %vm298_vm0, %v4368_v13 }
 0x188   : > { %3604 = vmatprep.subr.msk.bf16.mxu0 %vm464_vm3, %v1239_v48 }
 0x18e   : > { %3213 = vmatmul.mubr.msk.bf16.gmra.mrb[4].mxu0 %vm298_vm0, %v1033_v51  ;;  %v3721_v51 = vld [vmem:[#allocation10 + $0xc8] sm:$0xff]  }
 0x18f   : > { %3218 = vmatprep.mubr.msk.bf16.mxu0 %vm298_vm0, %v4331_v49  ;;  %v3706_v49 = vld [vmem:[#allocation10 + $0x50] sm:$0xff]  }
 0x196   : > { %3219 = vmatmul.mubr.msk.bf16.vlgmr.msra.gmra.mrb[0].mxu0 %vm298_vm0, %v4342_v54  ;;  %v1233_v54 = vld [vmem:[#allocation2 + $0x92] sm:$0xff] }
 0x197   : > { %3227 = vmatpush3.bf16.msra.mxu0 %v1253_v52  ;;  %3222 = vmatprep.mubr.msk.bf16.mxu0 %vm298_vm0, %v4353_v59  ;;  %v1237_v58 = vpack.c.bf16 %v1233_v54, %v926_v45  ;;  %v3708_v59 = vld [vmem:[#allocation10 + $0x58] sm:$0xff]   ;;  %v1360_v45 = vld [vmem:[#allocation3] sm:$0xff] }
 0x198   : > { %3236 = vmatprep.subr.bf16.mxu0 %v3702_v53 }
 0x19e   : > { %3223 = vmatmul.mubr.msk.bf16.gmra.mrb[4].mxu0 %vm298_vm0, %v1135_v56 }
 0x19f   : > { %3228 = vmatprep.mubr.msk.bf16.mxu0 %vm298_vm0, %v4373_v18 }
 0x1a6   : > { %3229 = vmatmul.mubr.msk.bf16.vlgmr.msra.gmra.mrb[0].mxu0 %vm298_vm0, %v4376_v21 }
 0x1a7   : > { %3232 = vmatprep.mubr.msk.bf16.mxu0 %vm298_vm0, %v4383_v25  ;;  %3237 = vmatpush3.bf16.msra.mxu0 %v3702_v53  ;;  %v3724_v53 = vld [vmem:[#allocation10 + $0x18] sm:$0xff]  }
 0x1a8   : > { %3238 = vmatprep.subr.bf16.mxu0 %v3704_v57 }
 0x1ab   : > { %3239 = vmatpush3.bf16.msra.mxu0 %v3704_v57 }
 0x1ac   : > { %3240 = vmatprep.subr.bf16.mxu0 %v3706_v49 }
 0x1ae   : > { %3233 = vmatmul.mubr.msk.bf16.gmra.mrb[4].mxu0 %vm298_vm0, %v1237_v58  ;;  %v3726_v58 = vld [vmem:[#allocation10 + $0x20] sm:$0xff]  }
 0x1af   : > { %3241 = vmatpush3.bf16.msra.mxu0 %v3706_v49  ;;  %v3723_v49 = vld [vmem:[#allocation10 + $0xd0] sm:$0xff]  }
 0x1b0   : > { %3242 = vmatprep.subr.bf16.mxu0 %v3708_v59 }
 0x1b3   : > { %3243 = vmatpush3.bf16.msra.mxu0 %v3708_v59 }
 0x1b4   : > { %3244 = vmatprep.subr.bf16.mxu0 %v3710_v60 }
 0x1b7   : > { %3245 = vmatpush3.bf16.msra.mxu0 %v3710_v60 }
 0x1b8   : > { %3246 = vmatprep.subr.bf16.mxu0 %v3712_v61 }
 0x1bb   : > { %3247 = vmatpush3.bf16.msra.mxu0 %v3712_v61 }
 0x1bc   : > { %3248 = vmatprep.subr.bf16.mxu0 %v3714_v63 }
 0x1bf   : > { %3249 = vmatpush3.bf16.msra.mxu0 %v3714_v63 }
 0x1c0   : > { %3250 = vmatprep.subr.bf16.mxu0 %v3716_v1 }
 0x1c3   : > { %3251 = vmatpush3.bf16.msra.mxu0 %v3716_v1 }
 0x1c4   : > { %3260 = vmatprep.subr.bf16.mxu0 %v3718_v3 }
 0x279   : > { %v3230_v7 = vpop.f32.mrb[0].mxu0 }
 0x27a   : > { %v1337_v8 = vadd.f32 %v3230_v7, %v2912_v6  ;;  %v1289_v9 = vpop.f32.mrb[1].mxu0  ;;  %v3732_v7 = vld [vmem:[#allocation10 + $0x38] sm:$0xff]  }
 0x27b   : > { %v1335_v10 = vadd.f32 %v2912_v6, %v1289_v9  ;;  %v3231_v11 = vpop.f32.mrb[2].mxu0  ;;  %v4524_v9 = vld [vmem:[#allocation10 + $0x200] sm:$0xff]  }
 0x27c   : > { %v4439_v12 = vmax.f32 %v1337_v8, 0.0  ;;  %v1338_v13 = vadd.f32 %v3231_v11, %v2912_v6  ;;  %v1292_v14 = vpop.f32.mrb[3].mxu0  ;;  %v3731_v8 = vld [vmem:[#allocation10 + $0xf0] sm:$0xff]   ;;  %v3733_v11 = vld [vmem:[#allocation10 + $0xf8] sm:$0xff]  }
 0x27d   : > { %v4441_v16 = vmax.f32 %v1335_v10, 0.0  ;;  %v1336_v17 = vadd.f32 %v2912_v6, %v1292_v14 }
 0x27e   : > { %1354 = vst [vmem:[#allocation3 + $0x31] sm:$0xff] %v4439_v12  ;;  %v4444_v18 = vmax.f32 %v1338_v13, 0.0 }
 0x27f   : > { %1352 = vst [vmem:[#allocation3 + $0x11] sm:$0xff] %v4441_v16  ;;  %v4447_v19 = vmax.f32 %v1336_v17, 0.0  ;;  %v1396_v20 = vpack.c.bf16 %v4441_v16, %v1388_v15 }
 0x280   : > { %1355 = vst [vmem:[#allocation3 + $0x41] sm:$0xff] %v4444_v18  ;;  %v1952_v21 = vpack.c.bf16 %v4444_v18, %v4439_v12 }
 0x281   : > { %1353 = vst [vmem:[#allocation3 + $0x21] sm:$0xff] %v4447_v19  ;;  %v3234_v22 = vpop.f32.mrb[4].mxu0  ;;  %3252 = vmatprep.mubr.bf16.mxu0 %v1396_v20  ;;  %v4456_v23 = vpack.c.bf16 %v4439_v12, %v4447_v19  ;;  %v1951_v25 = vpack.c.bf16 %v4447_v19, %v4441_v16  ;;  %v4531_v20 = vld [vmem:[#allocation10 + $0x208] sm:$0xff]   ;;  %v3746_v16 = vld [vmem:[#allocation10 + $0x130] sm:$0xff]   ;;  %v3748_v19 = vld [vmem:[#allocation10 + $0x138] sm:$0xff]  }
 0x282   : > { %v1341_v26 = vadd.f32 %v3234_v22, %v2912_v6  ;;  %v1305_v27 = vpop.f32.mrb[5].mxu0  ;;  %v3734_v22 = vld [vmem:[#allocation10 + $0x100] sm:$0xff]  }
 0x283   : > { %v1339_v28 = vadd.f32 %v2912_v6, %v1305_v27  ;;  %v3235_v29 = vpop.f32.mrb[6].mxu0  ;;  %3253 = vmatmul.mubr.bf16.vlgmr.msra.gmra.mrb[8].mxu0 %v4456_v23  ;;  %v3754_v12 = vld [vmem:[#allocation10 + $0x160] sm:$0xff]  }
 0x284   : > { %v4461_v30 = vmax.f32 %v1341_v26, 0.0  ;;  %v1342_v31 = vadd.f32 %v3235_v29, %v2912_v6  ;;  %v1308_v32 = vpop.f32.mrb[7].mxu0  ;;  %3261 = vmatpush3.bf16.msra.mxu0 %v3718_v3  ;;  %v4537_v26 = vld [vmem:[#allocation10 + $0x210] sm:$0xff]  }
 0x285   : > { %v4463_v34 = vmax.f32 %v1339_v28, 0.0  ;;  %v1340_v35 = vadd.f32 %v2912_v6, %v1308_v32  ;;  %3262 = vmatprep.subr.bf16.mxu0 %v3720_v24  ;;  %v4474_v41 = vld [vmem:[#allocation3 + $0x32] sm:$0xff]  ;;  %v3729_v6 = vld [vmem:[#allocation10 + $0xe8] sm:$0xff]  }
 0x286   : > { %1358 = vst [vmem:[#allocation3 + $0x71] sm:$0xff] %v4461_v30  ;;  %v4466_v36 = vmax.f32 %v1342_v31, 0.0  ;;  %v4468_v37 = vld [vmem:[#allocation3 + $0x12] sm:$0xff]  ;;  %v3736_v28 = vld [vmem:[#allocation10 + $0x108] sm:$0xff]  }
 0x287   : > { %1356 = vst [vmem:[#allocation3 + $0x51] sm:$0xff] %v4463_v34  ;;  %v4471_v39 = vmax.f32 %v1340_v35, 0.0  ;;  %v1651_v40 = vpack.c.bf16 %v4468_v37, %v1643_v33  ;;  %v4478_v42 = vpack.c.bf16 %v4463_v34, %v4444_v18  ;;  %v4480_v43 = vld [vmem:[#allocation3 + $0x42] sm:$0xff]  ;;  %v1361_v46 = vld [vmem:[#allocation3 + $0x10] sm:$0xff] }
 0x288   : > { %1359 = vst [vmem:[#allocation3 + $0x81] sm:$0xff] %v4466_v36  ;;  %v4483_v44 = vld [vmem:[#allocation3 + $0x22] sm:$0xff]  ;;  %3263 = vmatpush3.bf16.msra.mxu0 %v3720_v24  ;;  %v1954_v47 = vpack.c.bf16 %v4466_v36, %v4461_v30  ;;  %v2102_v48 = vpack.c.bf16 %v4480_v43, %v4474_v41  ;;  %v1368_v57 = vpack.c.bf16 %v1361_v46, %v1360_v45  ;;  %v1363_v13 = vld [vmem:[#allocation3 + $0x30] sm:$0xff] }
 0x289   : > { %1357 = vst [vmem:[#allocation3 + $0x61] sm:$0xff] %v4471_v39  ;;  %3300 = vmatprep.mubr.bf16.mxu1 %v1651_v40  ;;  %v4492_v50 = vpack.c.bf16 %v4474_v41, %v4483_v44  ;;  %3256 = vmatprep.mubr.bf16.mxu0 %v4478_v42  ;;  %v4497_v52 = vpack.c.bf16 %v4461_v30, %v4471_v39  ;;  %v1794_v60 = vld [vmem:[#allocation3 + $0x20] sm:$0xff]  ;;  %v4543_v33 = vld [vmem:[#allocation10 + $0x218] sm:$0xff]   ;;  %v4551_v40 = vld [vmem:[#allocation10 + $0x220] sm:$0xff]  }
 0x28a   : > { %3264 = vmatprep.subr.bf16.mxu0 %v3722_v38  ;;  %v1953_v55 = vpack.c.bf16 %v4471_v39, %v4463_v34  ;;  %v2101_v56 = vpack.c.bf16 %v4483_v44, %v4468_v37  ;;  %v1801_v1 = vpack.c.bf16 %v1794_v60, %v1361_v46  ;;  %v4526_v14 = vpack.c.bf16 %v1363_v13, %v1794_v60  ;;  %v1796_v15 = vld [vmem:[#allocation3 + $0x40] sm:$0xff]  ;;  %v3740_v46 = vld [vmem:[#allocation10 + $0x118] sm:$0xff]   ;;  %v3758_v30 = vld [vmem:[#allocation10 + $0x180] sm:$0xff]  }
 0x28b   : > { %3301 = vmatmul.mubr.bf16.vlgmr.msra.gmra.mrb[0].mxu1 %v4492_v50  ;;  %3257 = vmatmul.mubr.bf16.gmra.mrb[12].mxu0 %v4497_v52  ;;  %v1802_v27 = vpack.c.bf16 %v1796_v15, %v1363_v13  ;;  %v3738_v35 = vld [vmem:[#allocation10 + $0x110] sm:$0xff]   ;;  %v3755_v18 = vld [vmem:[#allocation10 + $0x168] sm:$0xff]   ;;  %v3757_v34 = vld [vmem:[#allocation10 + $0x178] sm:$0xff]  }
 0x28c   : > { %3309 = vmatpush3.bf16.msra.mxu1 %v4436_v5  ;;  %3265 = vmatpush3.bf16.msra.mxu0 %v3722_v38  ;;  %v3730_v5 = vld [vmem:[#allocation10 + $0x30] sm:$0xff]   ;;  %v3759_v39 = vld [vmem:[#allocation10 + $0x188] sm:$0xff]   ;;  %v3762_v41 = vld [vmem:[#allocation10 + $0x1a0] sm:$0xff]  }
 0x28d   : > { %3310 = vmatprep.subr.bf16.mxu1 %v3721_v51  ;;  %3276 = vmatprep.mubr.bf16.mxu0 %v1368_v57  ;;  %v4514_v62 = vld [vmem:[#allocation3 + $0x72] sm:$0xff]  ;;  %v3744_v57 = vld [vmem:[#allocation10 + $0x128] sm:$0xff]   ;;  %v3752_v60 = vld [vmem:[#allocation10 + $0x150] sm:$0xff]  }
 0x28e   : > { %v4506_v54 = vld [vmem:[#allocation3 + $0x52] sm:$0xff]  ;;  %3266 = vmatprep.subr.bf16.mxu0 %v3724_v53  ;;  %v3760_v37 = vld [vmem:[#allocation10 + $0x190] sm:$0xff]  }
 0x28f   : > { %v4510_v59 = vpack.c.bf16 %v4506_v54, %v4480_v43  ;;  %v1365_v10 = vld [vmem:[#allocation3 + $0x50] sm:$0xff]  ;;  %v4546_v38 = vld [vmem:[#allocation3 + $0x80] sm:$0xff] }
 0x290   : > { %3311 = vmatpush3.bf16.msra.mxu1 %v3721_v51  ;;  %v4512_v61 = vld [vmem:[#allocation3 + $0x62] sm:$0xff]  ;;  %3267 = vmatpush3.bf16.msra.mxu0 %v3724_v53  ;;  %v4529_v17 = vpack.c.bf16 %v1365_v10, %v1796_v15  ;;  %v1367_v31 = vld [vmem:[#allocation3 + $0x70] sm:$0xff] }
 0x291   : > { %3304 = vmatprep.mubr.bf16.mxu1 %v4510_v59  ;;  %3312 = vmatprep.subr.bf16.mxu1 %v3723_v49  ;;  %v4519_v63 = vpack.c.bf16 %v4514_v62, %v4512_v61  ;;  %v2103_v3 = vpack.c.bf16 %v4512_v61, %v4506_v54  ;;  %v1798_v24 = vld [vmem:[#allocation3 + $0x60] sm:$0xff]  ;;  %v1804_v45 = vpack.c.bf16 %v4546_v38, %v1367_v31  ;;  %v3766_v54 = vld [vmem:[#allocation10 + $0x1c0] sm:$0xff]  }
 0x292   : > { %3268 = vmatprep.subr.bf16.mxu0 %v3726_v58  ;;  %v1803_v29 = vpack.c.bf16 %v1798_v24, %v1365_v10  ;;  %v4540_v32 = vpack.c.bf16 %v1367_v31, %v1798_v24  ;;  %v4556_v51 = vld [vmem:[#allocation10 + $0x228] sm:$0xff]   ;;  %v4563_v53 = vld [vmem:[#allocation10 + $0x230] sm:$0xff]  }
 0x293   : > { %3305 = vmatmul.mubr.bf16.gmra.mrb[4].mxu1 %v4519_v63  ;;  %v4591_v44 = vld [vmem:[#allocation3 + $0x82] sm:$0xff] }
 0x294   : > { %3313 = vmatpush3.bf16.msra.mxu1 %v3723_v49  ;;  %3324 = vmatprep.mubr.bf16.mxu1 %v1801_v1  ;;  %v4567_v49 = vld [vmem:[#allocation10 + $0x238] sm:$0xff]   ;;  %v3763_v43 = vld [vmem:[#allocation10 + $0x1a8] sm:$0xff]   ;;  %v3768_v61 = vld [vmem:[#allocation10 + $0x1d0] sm:$0xff]  }
 0x295   : > { %3314 = vmatprep.subr.bf16.mxu1 %v3725_v0  ;;  %3269 = vmatpush3.bf16.msra.mxu0 %v3726_v58  ;;  %v3751_v58 = vld [vmem:[#allocation10 + $0x148] sm:$0xff]  }
 0x296   : > { %3270 = vmatprep.subr.bf16.mxu0 %v3728_v2 }
 0x298   : > { %3315 = vmatpush3.bf16.msra.mxu1 %v3725_v0  ;;  %v3753_v0 = vld [vmem:[#allocation10 + $0x158] sm:$0xff]  }
 0x299   : > { %3316 = vmatprep.subr.bf16.mxu1 %v3727_v4  ;;  %3271 = vmatpush3.bf16.msra.mxu0 %v3728_v2  ;;  %v3769_v2 = vld [vmem:[#allocation10 + $0x1d8] sm:$0xff]  }
 0x29a   : > { %3272 = vmatprep.subr.bf16.mxu0 %v3730_v5 }
 0x29c   : > { %3317 = vmatpush3.bf16.msra.mxu1 %v3727_v4  ;;  %v3771_v4 = vld [vmem:[#allocation10 + $0x1e8] sm:$0xff]  }
 0x29d   : > { %3318 = vmatprep.subr.bf16.mxu1 %v3729_v6  ;;  %3273 = vmatpush3.bf16.msra.mxu0 %v3730_v5  ;;  %v3772_v5 = vld [vmem:[#allocation10 + $0x1f0] sm:$0xff]  }
 0x29e   : > { %3274 = vmatprep.subr.bf16.mxu0 %v3732_v7 }
 0x2a0   : > { %3319 = vmatpush3.bf16.msra.mxu1 %v3729_v6  ;;  %v3773_v6 = vld [vmem:[#allocation10 + $0x1f8] sm:$0xff]  }
 0x2a1   : > { %3320 = vmatprep.subr.bf16.mxu1 %v3731_v8  ;;  %3275 = vmatpush3.bf16.msra.mxu0 %v3732_v7 }
 0x2a2   : > { %3428 = vmatprep.subr.bf16.mxu0 %v4524_v9 }
 0x2a4   : > { %3321 = vmatpush3.bf16.msra.mxu1 %v3731_v8  ;;  %3277 = vmatmul.mubr.bf16.vlgmr.msra.gmra.mrb[8].mxu0 %v4526_v14 }
 0x2a5   : > { %3322 = vmatprep.subr.bf16.mxu1 %v3733_v11  ;;  %3280 = vmatprep.mubr.bf16.mxu0 %v4529_v17 }
 0x2a6   : > { %3429 = vmatpush3.bf16.msra.mxu0 %v4524_v9 }
 0x2a7   : > { %3430 = vmatprep.subr.bf16.mxu0 %v4531_v20 }
 0x2a8   : > { %3323 = vmatpush3.bf16.msra.mxu1 %v3733_v11 }
 0x2a9   : > { %3332 = vmatprep.subr.bf16.mxu1 %v3734_v22 }
 0x2aa   : > { %3431 = vmatpush3.bf16.msra.mxu0 %v4531_v20 }
 0x2ab   : > { %3325 = vmatmul.mubr.bf16.vlgmr.msra.gmra.mrb[0].mxu1 %v1802_v27  ;;  %3432 = vmatprep.subr.bf16.mxu0 %v4537_v26 }
 0x2ac   : > { %3328 = vmatprep.mubr.bf16.mxu1 %v1803_v29  ;;  %3333 = vmatpush3.bf16.msra.mxu1 %v3734_v22 }
 0x2ad   : > { %3334 = vmatprep.subr.bf16.mxu1 %v3736_v28  ;;  %3281 = vmatmul.mubr.bf16.gmra.mrb[12].mxu0 %v4540_v32 }
 0x2ae   : > { %3433 = vmatpush3.bf16.msra.mxu0 %v4537_v26  ;;  %3444 = vmatprep.mubr.bf16.mxu0 %v4492_v50  ;;  %v3742_v50 = vld [vmem:[#allocation10 + $0x120] sm:$0xff]  }
 0x2af   : > { %3434 = vmatprep.subr.bf16.mxu0 %v4543_v33 }
 0x2b0   : > { %3335 = vmatpush3.bf16.msra.mxu1 %v3736_v28  ;;  %v2985_v28 = vld [vmem:[#allocation12] ss:$0 sm:$0xff] }
 0x2b1   : > { %3336 = vmatprep.subr.bf16.mxu1 %v3738_v35 }
 0x2b2   : > { %3435 = vmatpush3.bf16.msra.mxu0 %v4543_v33 }
 0x2b3   : > { %3329 = vmatmul.mubr.bf16.gmra.mrb[4].mxu1 %v1804_v45  ;;  %3436 = vmatprep.subr.bf16.mxu0 %v4551_v40 }
 0x2b4   : > { %3337 = vmatpush3.bf16.msra.mxu1 %v3738_v35  ;;  %3348 = vmatprep.mubr.bf16.mxu1 %v1951_v25  ;;  %v3750_v25 = vld [vmem:[#allocation10 + $0x140] sm:$0xff]  }
 0x2b5   : > { %3338 = vmatprep.subr.bf16.mxu1 %v3740_v46 }
 0x2b6   : > { %3437 = vmatpush3.bf16.msra.mxu0 %v4551_v40 }
 0x2b7   : > { %3438 = vmatprep.subr.bf16.mxu0 %v4556_v51 }
 0x2b8   : > { %3339 = vmatpush3.bf16.msra.mxu1 %v3740_v46 }
 0x2b9   : > { %3340 = vmatprep.subr.bf16.mxu1 %v3742_v50 }
 0x2ba   : > { %3439 = vmatpush3.bf16.msra.mxu0 %v4556_v51 }
 0x2bb   : > { %3440 = vmatprep.subr.bf16.mxu0 %v4563_v53 }
 0x2bc   : > { %3341 = vmatpush3.bf16.msra.mxu1 %v3742_v50 }
 0x2bd   : > { %3342 = vmatprep.subr.bf16.mxu1 %v3744_v57 }
 0x2be   : > { %3441 = vmatpush3.bf16.msra.mxu0 %v4563_v53 }
 0x2bf   : > { %3442 = vmatprep.subr.bf16.mxu0 %v4567_v49 }
 0x2c0   : > { %3343 = vmatpush3.bf16.msra.mxu1 %v3744_v57 }
 0x2c1   : > { %3344 = vmatprep.subr.bf16.mxu1 %v3746_v16 }
 0x2c2   : > { %3443 = vmatpush3.bf16.msra.mxu0 %v4567_v49 }
 0x2c4   : > { %3345 = vmatpush3.bf16.msra.mxu1 %v3746_v16 }
 0x2c5   : > { %3346 = vmatprep.subr.bf16.mxu1 %v3748_v19  ;;  %3445 = vmatmul.mubr.bf16.vlgmr.msra.gmra.mrb[16].mxu0 %v4510_v59  ;;  %v3767_v59 = vld [vmem:[#allocation10 + $0x1c8] sm:$0xff]  }
 0x2c8   : > { %3347 = vmatpush3.bf16.msra.mxu1 %v3748_v19 }
 0x2c9   : > { %3356 = vmatprep.subr.bf16.mxu1 %v3750_v25 }
 0x2cb   : > { %3349 = vmatmul.mubr.bf16.vlgmr.msra.gmra.mrb[0].mxu1 %v1952_v21  ;;  %v3756_v21 = vld [vmem:[#allocation10 + $0x170] sm:$0xff]  }
 0x2cc   : > { %3352 = vmatprep.mubr.bf16.mxu1 %v1953_v55  ;;  %3357 = vmatpush3.bf16.msra.mxu1 %v3750_v25  ;;  %v3761_v55 = vld [vmem:[#allocation10 + $0x198] sm:$0xff]  }
 0x2cd   : > { %3358 = vmatprep.subr.bf16.mxu1 %v3751_v58 }
 0x2d0   : > { %3359 = vmatpush3.bf16.msra.mxu1 %v3751_v58 }
 0x2d1   : > { %3360 = vmatprep.subr.bf16.mxu1 %v3752_v60 }
 0x2d3   : > { %3353 = vmatmul.mubr.bf16.gmra.mrb[4].mxu1 %v1954_v47  ;;  %v2104_v47 = vpack.c.bf16 %v4591_v44, %v4514_v62  ;;  %v2251_v62 = vld [vmem:[#allocation3 + $0x90] sm:$0xff] }
 0x2d4   : > { %3361 = vmatpush3.bf16.msra.mxu1 %v3752_v60  ;;  %3372 = vmatprep.mubr.bf16.mxu1 %v2101_v56  ;;  %v3765_v56 = vld [vmem:[#allocation10 + $0x1b8] sm:$0xff]   ;;  %v2255_v1 = vpack.c.bf16 %v2251_v62, %v4546_v38 }
 0x2d5   : > { %3362 = vmatprep.subr.bf16.mxu1 %v3753_v0 }
 0x2d8   : > { %3363 = vmatpush3.bf16.msra.mxu1 %v3753_v0 }
 0x2d9   : > { %3364 = vmatprep.subr.bf16.mxu1 %v3754_v12 }
 0x2dc   : > { %3365 = vmatpush3.bf16.msra.mxu1 %v3754_v12 }
 0x2dd   : > { %3366 = vmatprep.subr.bf16.mxu1 %v3755_v18 }
 0x2e0   : > { %3367 = vmatpush3.bf16.msra.mxu1 %v3755_v18 }
 0x2e1   : > { %3368 = vmatprep.subr.bf16.mxu1 %v3756_v21 }
 0x2e4   : > { %3369 = vmatpush3.bf16.msra.mxu1 %v3756_v21 }
 0x2e5   : > { %3370 = vmatprep.subr.bf16.mxu1 %v3757_v34 }
 0x2e8   : > { %3371 = vmatpush3.bf16.msra.mxu1 %v3757_v34 }
 0x2e9   : > { %3380 = vmatprep.subr.bf16.mxu1 %v3758_v30 }
 0x2eb   : > { %3373 = vmatmul.mubr.bf16.vlgmr.msra.gmra.mrb[0].mxu1 %v2102_v48  ;;  %v3764_v48 = vld [vmem:[#allocation10 + $0x1b0] sm:$0xff]  }
 0x2ec   : > { %3376 = vmatprep.mubr.bf16.mxu1 %v2103_v3  ;;  %3381 = vmatpush3.bf16.msra.mxu1 %v3758_v30  ;;  %v3770_v3 = vld [vmem:[#allocation10 + $0x1e0] sm:$0xff]  }
 0x2ed   : > { %3382 = vmatprep.subr.bf16.mxu1 %v3759_v39 }
 0x2f0   : > { %3383 = vmatpush3.bf16.msra.mxu1 %v3759_v39 }
 0x2f1   : > { %3384 = vmatprep.subr.bf16.mxu1 %v3760_v37 }
 0x2f3   : > { %3377 = vmatmul.mubr.bf16.gmra.mrb[4].mxu1 %v2104_v47 }
 0x2f4   : > { %3385 = vmatpush3.bf16.msra.mxu1 %v3760_v37  ;;  %3396 = vmatprep.mubr.bf16.mxu1 %v4526_v14 }
 0x2f5   : > { %3386 = vmatprep.subr.bf16.mxu1 %v3761_v55 }
 0x2f8   : > { %3387 = vmatpush3.bf16.msra.mxu1 %v3761_v55 }
 0x2f9   : > { %3388 = vmatprep.subr.bf16.mxu1 %v3762_v41 }
 0x2fc   : > { %3389 = vmatpush3.bf16.msra.mxu1 %v3762_v41 }
 0x2fd   : > { %3390 = vmatprep.subr.bf16.mxu1 %v3763_v43 }
 0x300   : > { %3391 = vmatpush3.bf16.msra.mxu1 %v3763_v43 }
 0x301   : > { %3392 = vmatprep.subr.bf16.mxu1 %v3764_v48 }
 0x304   : > { %3393 = vmatpush3.bf16.msra.mxu1 %v3764_v48 }
 0x305   : > { %3394 = vmatprep.subr.bf16.mxu1 %v3765_v56 }
 0x308   : > { %3395 = vmatpush3.bf16.msra.mxu1 %v3765_v56 }
 0x309   : > { %3404 = vmatprep.subr.bf16.mxu1 %v3766_v54 }
 0x30b   : > { %3397 = vmatmul.mubr.bf16.vlgmr.msra.gmra.mrb[0].mxu1 %v4529_v17 }
 0x30c   : > { %3400 = vmatprep.mubr.bf16.mxu1 %v4540_v32  ;;  %3405 = vmatpush3.bf16.msra.mxu1 %v3766_v54 }
 0x30d   : > { %3406 = vmatprep.subr.bf16.mxu1 %v3767_v59 }
 0x310   : > { %3407 = vmatpush3.bf16.msra.mxu1 %v3767_v59 }
 0x311   : > { %3408 = vmatprep.subr.bf16.mxu1 %v3768_v61 }
 0x313   : > { %3401 = vmatmul.mubr.bf16.gmra.mrb[4].mxu1 %v2255_v1 }
 0x314   : > { %3409 = vmatpush3.bf16.msra.mxu1 %v3768_v61  ;;  %3420 = vmatprep.mubr.bf16.mxu1 %v4456_v23  ;;  %v2401_v23 = vld [vmem:[#allocation3 + $0x91] sm:$0xff] }
 0x315   : > { %3410 = vmatprep.subr.bf16.mxu1 %v3769_v2  ;;  %v2405_v7 = vpack.c.bf16 %v2401_v23, %v4466_v36  ;;  %v2551_v36 = vld [vmem:[#allocation3 + $0x92] sm:$0xff] }
 0x318   : > { %3411 = vmatpush3.bf16.msra.mxu1 %v3769_v2 }
 0x319   : > { %3412 = vmatprep.subr.bf16.mxu1 %v3770_v3 }
 0x31c   : > { %3413 = vmatpush3.bf16.msra.mxu1 %v3770_v3 }
 0x31d   : > { %3414 = vmatprep.subr.bf16.mxu1 %v3771_v4 }
 0x320   : > { %3415 = vmatpush3.bf16.msra.mxu1 %v3771_v4 }
 0x321   : > { %3416 = vmatprep.subr.bf16.mxu1 %v3772_v5 }
 0x324   : > { %3417 = vmatpush3.bf16.msra.mxu1 %v3772_v5 }
 0x325   : > { %3418 = vmatprep.subr.bf16.mxu1 %v3773_v6 }
 0x328   : > { %3419 = vmatpush3.bf16.msra.mxu1 %v3773_v6 }
 0x329   : > { %3452 = vmatprep.subr.bf16.mxu1 %v4524_v9 }
 0x32b   : > { %3421 = vmatmul.mubr.bf16.vlgmr.msra.gmra.mrb[0].mxu1 %v4478_v42  ;;  %v2555_v42 = vpack.c.bf16 %v2551_v36, %v4591_v44 }
 0x32c   : > { %3424 = vmatprep.mubr.bf16.mxu1 %v4497_v52  ;;  %3460 = vmatpush3.bf16.msra.mxu1 %v4524_v9 }
 0x32d   : > { %3453 = vmatprep.subr.bf16.mxu1 %v4531_v20 }
 0x330   : > { %3461 = vmatpush3.bf16.msra.mxu1 %v4531_v20 }
 0x331   : > { %3454 = vmatprep.subr.bf16.mxu1 %v4537_v26 }
 0x333   : > { %3425 = vmatmul.mubr.bf16.gmra.mrb[4].mxu1 %v2405_v7 }
 0x334   : > { %3462 = vmatpush3.bf16.msra.mxu1 %v4537_v26  ;;  %3448 = vmatprep.mubr.bf16.mxu1 %v4519_v63 }
 0x335   : > { %3455 = vmatprep.subr.bf16.mxu1 %v4543_v33 }
 0x338   : > { %3463 = vmatpush3.bf16.msra.mxu1 %v4543_v33 }
 0x339   : > { %3456 = vmatprep.subr.bf16.mxu1 %v4551_v40 }
 0x33c   : > { %3464 = vmatpush3.bf16.msra.mxu1 %v4551_v40 }
 0x33d   : > { %3457 = vmatprep.subr.bf16.mxu1 %v4556_v51 }
 0x340   : > { %3465 = vmatpush3.bf16.msra.mxu1 %v4556_v51 }
 0x341   : > { %3458 = vmatprep.subr.bf16.mxu1 %v4563_v53 }
 0x344   : > { %3466 = vmatpush3.bf16.msra.mxu1 %v4563_v53 }
 0x345   : > { %3459 = vmatprep.subr.bf16.mxu1 %v4567_v49 }
 0x348   : > { %3467 = vmatpush3.bf16.msra.mxu1 %v4567_v49 }
 0x34b   : > { %3449 = vmatmul.mubr.bf16.vlgmr.msra.gmra.mrb[4].mxu1 %v2555_v42 }
 0x377   : > { %v3278_v52 = vpop.f32.mrb[8].mxu0 }
 0x378   : > { %v1612_v63 = vpop.f32.mrb[9].mxu0 }
 0x379   : > { %v3279_v8 = vpop.f32.mrb[10].mxu0 }
 0x37a   : > { %v1615_v9 = vpop.f32.mrb[11].mxu0 }
 0x380   : > { %v3282_v10 = vpop.f32.mrb[12].mxu0 }
 0x381   : > { %v1628_v11 = vpop.f32.mrb[13].mxu0 }
 0x382   : > { %v3283_v13 = vpop.f32.mrb[14].mxu0 }
 0x383   : > { %v1631_v14 = vpop.f32.mrb[15].mxu0 }
 0x398   : > { %v3446_v15 = vpop.f32.mrb[16].mxu0 }
 0x399   : > { %v2655_v17 = vpop.f32.mrb[17].mxu0 }
 0x39a   : > { %v3447_v20 = vpop.f32.mrb[18].mxu0 }
 0x39b   : > { %v2658_v22 = vpop.f32.mrb[19].mxu0 }
 0x3fe   : > { %v3422_v24 = vpop.f32.mrb[0].mxu1 }
 0x3ff   : > { %v3468_v26 = vadd.f32 %v3422_v24, %v3278_v52  ;;  %v2505_v27 = vpop.f32.mrb[1].mxu1 }
 0x400   : > { %v3470_v29 = vadd.f32 %v2505_v27, %v1612_v63  ;;  %v3423_v31 = vpop.f32.mrb[2].mxu1 }
 0x401   : > { %v3469_v32 = vadd.f32 %v3468_v26, %v3446_v15  ;;  %v3472_v33 = vadd.f32 %v3423_v31, %v3279_v8  ;;  %v2508_v35 = vpop.f32.mrb[3].mxu1 }
 0x402   : > { %v3471_v38 = vadd.f32 %v3470_v29, %v2655_v17  ;;  %v3474_v40 = vadd.f32 %v2508_v35, %v1615_v9 }
 0x403   : > { %v2703_v45 = vadd.f32 %v3469_v32, %v2985_v28  ;;  %v3473_v46 = vadd.f32 %v3472_v33, %v3447_v20 }
 0x404   : > { %v2701_v51 = vadd.f32 %v3471_v38, %v2985_v28  ;;  %v3475_v50 = vadd.f32 %v3474_v40, %v2658_v22 }
 0x405   : > { %v2711_v53 = vmax.f32 %v2703_v45, 0.0  ;;  %v2704_v57 = vadd.f32 %v3473_v46, %v2985_v28 }
 0x406   : > { %v2709_v49 = vmax.f32 %v2701_v51, 0.0  ;;  %v2702_v16 = vadd.f32 %v3475_v50, %v2985_v28 }
 0x407   : > { %2720 = vst.msk [vmem:[%s296_s10 + $0x10] sm:$0xff] %vm2717_vm4, %v2711_v53  ;;  %v2712_v19 = vmax.f32 %v2704_v57, 0.0 }
 0x408   : > { %2718 = vst.msk [vmem:[%s296_s10] sm:$0xff] %vm2717_vm4, %v2709_v49  ;;  %v2710_v25 = vmax.f32 %v2702_v16, 0.0 }
 0x409   : > { %2721 = vst.msk [vmem:[%s296_s10 + $0x18] sm:$0xff] %vm2717_vm4, %v2712_v19 }
 0x40a   : > { %2719 = vst.msk [vmem:[%s296_s10 + $0x8] sm:$0xff] %vm2717_vm4, %v2710_v25 }
 0x41e   : > { %v3450_v58 = vpop.f32.mrb[4].mxu1 }
 0x41f   : > { %v3476_v60 = vadd.f32 %v3450_v58, %v3282_v10  ;;  %v2671_v0 = vpop.f32.mrb[5].mxu1 }
 0x420   : > { %v3477_v12 = vadd.f32 %v2671_v0, %v1628_v11  ;;  %v3451_v18 = vpop.f32.mrb[6].mxu1 }
 0x421   : > { %v2707_v21 = vadd.f32 %v3476_v60, %v2985_v28  ;;  %v3478_v34 = vadd.f32 %v3451_v18, %v3283_v13  ;;  %v2674_v30 = vpop.f32.mrb[7].mxu1 }
 0x422   : > { %v2705_v39 = vadd.f32 %v3477_v12, %v2985_v28  ;;  %v3479_v37 = vadd.f32 %v2674_v30, %v1631_v14 }
 0x423   : > { %v2715_v44 = vmax.f32 %v2707_v21, 0.0  ;;  %v2708_v47 = vadd.f32 %v3478_v34, %v2985_v28 }
 0x424   : > { %v2713_v55 = vmax.f32 %v2705_v39, 0.0  ;;  %v2706_v41 = vadd.f32 %v3479_v37, %v2985_v28 }
 0x425   : > { %2724 = vst.msk [vmem:[%s296_s10 + $0x30] sm:$0xff] %vm2717_vm4, %v2715_v44  ;;  %v2716_v43 = vmax.f32 %v2708_v47, 0.0 }
 0x426   : > { %2722 = vst.msk [vmem:[%s296_s10 + $0x20] sm:$0xff] %vm2717_vm4, %v2713_v55  ;;  %v2714_v48 = vmax.f32 %v2706_v41, 0.0 }
 0x427   : > { %2725 = vst.msk [vmem:[%s296_s10 + $0x38] sm:$0xff] %vm2717_vm4, %v2716_v43 }
 0x428   : > { %2723 = vst.msk [vmem:[%s296_s10 + $0x28] sm:$0xff] %vm2717_vm4, %v2714_v48 }
 0x429   : > { %3929 = shalt.err (!%p3926_p13)
}
 0x42a   : > { %s3930_s15 = scalar_lea.hbm %s4631_s8, 1024  ;;  %s3934_s24 = scalar_lea.hbm %s4685_s5, 2048 }
 0x42b   : > { %p3931_p9 = scmp.ne.s32.totalorder %s4631_s8, %s3930_s15  ;;  %p3935_p6 = scmp.lt.u32.totalorder %s4631_s8, %s4685_s5 }
 0x42c   : > { %p3936_p10 = scmp.lt.u32.totalorder %s3934_s24, %s3930_s15  ;;  %p3938_p4 = scmp.lt.u32.totalorder %s3930_s15, %s4631_s8 }
 0x42d   : > { %p3932_p0 = pnand %p3931_p9, %p4205_p8 }
 0x42e   : > { %p3937_p3 = por %p3936_p10, %p3935_p6 }
 0x42f   : > { %p3933_p11 = pneg %p3932_p0 }
 0x430   : > { %p3939_p5 = por %p3938_p4, %p3937_p3 }
 0x432   : > { %p3940_p7 = pnand %p3939_p5, %p3933_p11 }
 0x434   : > { %3943 = shalt.err (!%p3940_p7)
}
 0x435   : > { %s4006_s13 = smov 128   ;;  %s4007_s28 = smov 8  }
 0x436   : > { %3623 = dma.vmem_to_hbm [thread:$0]  (%p4205_p8), %s4633_s27, 1024, %s4631_s8, %s2727_s22, %s4006_s13, %s4006_s13, %s4007_s28  }
 0x437 PF: > { %s2755_s23 = sand.u32 1, %s3978_s18   ;;  %p4703_p12 = scmp.ne.s32.totalorder %s4690_s25, 0 }
 0x438   : > { %p4704_p2 = scmp.ge.s32.totalorder %s3990_s21, 2  ;;  %s2756_s9 = scalar_lea.sflag [#allocation6], %s2755_s23 }
 0x43a   : > { %p3643_p1 = pnand %p4704_p2, %p4703_p12 }
 0x43c   : > { %3973 = dma.done.wait (!%p3643_p1), %s2756_s9, 1024  }
 0x43d   : > { %3975 = vsyncadd (!%p3643_p1), %s2756_s9, 4294966272  ;;  %p20_p13 = scmp.ge.s32.totalorder %s4192_s12, 4   ;;  %s4705_s18 = smov %s3982_s19 }
 0x43e   : > { %s4706_s19 = smov %s3986_s20  ;;  %s4707_s20 = smov %s4201_s16 }
 0x43f   : > { %s4708_s21 = smov %s4192_s12  ;;  %22 = sbr.rel (!%p20_p13) target bundleno = 7 (0x7), region = 124 }
 0x446   :  { %2761 = vsyncpa [#allocation5], 1 }
 0x447   :  { %2763 = vsyncpa [#allocation5 + $0x1], 1 }
 0x448   :  { %2764 = vsyncpa [#allocation8], 1 }
 0x449   :  { %2765 = vsyncpa [#allocation11], 1 }
 0x44a   :  { %2766 = vsyncpa [#allocation6], 1 }
 0x44b   :  { %2768 = vsyncpa [#allocation6 + $0x1], 1 }

</bundles_post_ra>
